<compile_context>
chip_gen: v5e
topology: v5e:2x2
jax: 0.10.0
libtpu: 0.0.40
codegen_flags: <defaults>
</compile_context>

<pallas_src>
import functools

import jax
import jax.numpy as jnp
import numpy as np
from jax.experimental import pallas as pl
from jax.experimental.pallas import tpu as pltpu


# -----------------------------------------------------------------------------
# Fused forward kernel (one batch block per grid step).
# -----------------------------------------------------------------------------
def _fused_forward_kernel(p_ref, w1_ref, b1_ref, w2_ref, b2_ref,
                          fw1_ref, fb1_ref, fw2_ref, fb2_ref, o_ref,
                          *, hp1, wp1, s1, s2, s3):
    """Ref shapes (per grid step):
      p_ref  : (nb, 4*hp1*wp1, 9*Cin)  im2col of conv1, rows grouped by pool phase
      w1_ref : (9*Cin, C)              conv1 weights, (ky,kx,cin)-major
      b1_ref : (1, C)
      w2_ref : (9, C, C)               conv2 weights per tap (ky*3+kx)
      b2_ref : (1, C)
      fw1_ref: (C, 512)   fb1_ref: (1, 512)
      fw2_ref: (512, 10)  fb2_ref: (1, 10)
      o_ref  : (1, nb, 10)
    """
    nb = p_ref.shape[0]
    C = w1_ref.shape[1]
    Q = hp1 * wp1                    # stage-1 pooled positions (e.g. 49)
    hc2, wc2 = hp1 - 2, wp1 - 2      # conv2 VALID output size (e.g. 5x5)
    hp2, wp2 = hc2 // 2, wc2 // 2    # stage-2 pooled map (e.g. 2x2)

    def lrelu(v, s):
        return jnp.where(v > 0, v, s * v)

    w1 = w1_ref[...]                                        # (9*Cin, C)
    b1q = jnp.broadcast_to(b1_ref[...], (Q, C))             # hoisted broadcast
    b2 = b2_ref[...]                                        # (1, C)

    gaps = []
    for idx in range(nb):
        # --- conv1: single im2col matmul, M = 4*Q (=196), K = 9*Cin (=27) ---
        c1 = jnp.dot(p_ref[idx], w1, preferred_element_type=jnp.float32)

        # --- 2x2/2 max pool: rows pre-grouped into the 4 pool phases, so the
        #     pool is 3 contiguous vector maxima.  Bias + LeakyReLU after the
        #     pool (exactly equivalent since both commute with max). ---------
        m = jnp.maximum(jnp.maximum(c1[0:Q, :], c1[Q:2 * Q, :]),
                        jnp.maximum(c1[2 * Q:3 * Q, :], c1[3 * Q:4 * Q, :]))
        a1 = lrelu(m + b1q, s1)                              # (Q, C), row = i*wp1+j

        # --- conv2: per-tap stacked matmuls, M = hc2*wc2 (=25), K = C (=128) -
        acc = jnp.zeros((hc2 * wc2, C), jnp.float32)
        for ky in range(3):
            for kx in range(3):
                patch = jnp.concatenate(
                    [a1[(h + ky) * wp1 + kx:(h + ky) * wp1 + kx + wc2, :]
                     for h in range(hc2)], axis=0)           # (hc2*wc2, C)
                acc = acc + jnp.dot(patch, w2_ref[ky * 3 + kx],
                                    preferred_element_type=jnp.float32)

        # --- 2x2/2 max pool (floor) + bias + LeakyReLU + global average pool -
        gap = jnp.zeros((1, C), jnp.float32)
        for i in range(hp2):
            for j in range(wp2):
                r = 2 * i * wc2 + 2 * j
                quad = jnp.maximum(acc[r:r + 2, :], acc[r + wc2:r + wc2 + 2, :])
                cell = jnp.maximum(quad[0:1, :], quad[1:2, :])       # (1, C)
                gap = gap + lrelu(cell + b2, s2)
        gaps.append(gap * (1.0 / (hp2 * wp2)))               # (1, C)

    # --- MLP head, batched over the block: (nb,C)@(C,512) -> (nb,512)@(512,10)
    x = jnp.concatenate(gaps, axis=0) if nb > 1 else gaps[0]
    h = lrelu(jnp.dot(x, fw1_ref[...], preferred_element_type=jnp.float32)
              + fb1_ref[...], s3)
    o_ref[0] = (jnp.dot(h, fw2_ref[...], preferred_element_type=jnp.float32)
                + fb2_ref[...])


# -----------------------------------------------------------------------------
# Wrapper-side layout glue (plain JAX, outside the kernel).
# -----------------------------------------------------------------------------
def _im2col_pool_phases(x, kh, kw):
    """im2col for a VALID kh x kw conv with rows grouped into the four 2x2
    max-pool phases: returns (N, 4*Hp*Wp, kh*kw*C) where row q*Hp*Wp + i*Wp + j
    holds the patch for conv output position (2*i + q//2, 2*j + q%2)."""
    N, H, W, C = x.shape
    Hc, Wc = H - kh + 1, W - kw + 1
    Hp, Wp = Hc // 2, Wc // 2
    taps = [x[:, ky:ky + Hc, kx:kx + Wc, :] for ky in range(kh) for kx in range(kw)]
    p = jnp.concatenate(taps, axis=-1)                       # (N, Hc, Wc, kh*kw*C)
    quarters = [p[:, dr:2 * Hp:2, dc:2 * Wp:2, :].reshape(N, Hp * Wp, kh * kw * C)
                for dr in range(2) for dc in range(2)]
    return jnp.concatenate(quarters, axis=1), Hp, Wp


def _block_batch(n):
    # Keep at least 2 grid steps (so both v7x TensorCores get work) while
    # batching several images per step to amortize per-step overhead.
    for nb in (8, 4, 2):
        if n % nb == 0 and n // nb >= 2:
            return nb
    return 1


# -----------------------------------------------------------------------------
# Full forward (matches ModelZeroOne.forward, inference semantics)
# -----------------------------------------------------------------------------
def model_zero_one_forward(x_nchw, params):
    # Conv2d(3,128,3) -> LeakyReLU(0.02) -> MaxPool(2) -> Dropout(0.25)
    # Conv2d(128,128,3) -> LeakyReLU(0.025) -> MaxPool(2) -> Dropout(0.2)
    # AdaptiveAvgPool2d((1,1)) -> Flatten
    # Linear(128,512) -> LeakyReLU(0.02) -> Dropout(0.5) -> Linear(512,10)
    # TODO(synk): Dropout layers are identity (inference semantics); stochastic
    # training-mode dropout is not implemented.
    x = jnp.transpose(x_nchw, (0, 2, 3, 1)).astype(jnp.float32)   # NCHW -> NHWC
    N = x.shape[0]
    patches, hp1, wp1 = _im2col_pool_phases(x, 3, 3)
    assert hp1 - 2 >= 2 and wp1 - 2 >= 2, "input spatially too small"

    C = params["cw1"].shape[-1]                  # 128
    K1 = patches.shape[-1]                       # 27
    P1 = patches.shape[1]                        # 4*hp1*wp1
    D1 = params["fw1"].shape[1]                  # 512
    D2 = params["fw2"].shape[1]                  # 10

    w1r = params["cw1"].reshape(K1, C)           # (27, 128)
    w2r = params["cw2"].reshape(9, C, C)         # tap-major (ky*3+kx, Cin, Cout)

    nb = _block_batch(N)
    G = N // nb

    kernel = functools.partial(_fused_forward_kernel, hp1=hp1, wp1=wp1,
                               s1=0.02, s2=0.025, s3=0.02)
    out = pl.pallas_call(
        kernel,
        out_shape=jax.ShapeDtypeStruct((G, nb, D2), jnp.float32),
        grid=(G,),
        in_specs=[
            pl.BlockSpec((nb, P1, K1), lambda n: (n, 0, 0)),
            pl.BlockSpec((K1, C), lambda n: (0, 0)),
            pl.BlockSpec((1, C), lambda n: (0, 0)),
            pl.BlockSpec((9, C, C), lambda n: (0, 0, 0)),
            pl.BlockSpec((1, C), lambda n: (0, 0)),
            pl.BlockSpec((C, D1), lambda n: (0, 0)),
            pl.BlockSpec((1, D1), lambda n: (0, 0)),
            pl.BlockSpec((D1, D2), lambda n: (0, 0)),
            pl.BlockSpec((1, D2), lambda n: (0, 0)),
        ],
        out_specs=pl.BlockSpec((1, nb, D2), lambda n: (n, 0, 0)),
        compiler_params=pltpu.CompilerParams(dimension_semantics=("parallel",)),
    )(patches, w1r, params["cb1"].reshape(1, C), w2r, params["cb2"].reshape(1, C),
      params["fw1"], params["fb1"].reshape(1, D1),
      params["fw2"], params["fb2"].reshape(1, D2))
    return out.reshape(N, D2)


# -----------------------------------------------------------------------------
# Deterministic parameter init (PyTorch-like uniform(-1/sqrt(fan_in), ...))
# -----------------------------------------------------------------------------
def init_params(key):
    ks = jax.random.split(key, 8)

    def u(k, shape, fan_in):
        bound = 1.0 / np.sqrt(fan_in)
        return jax.random.uniform(k, shape, jnp.float32, -bound, bound)

    return {
        "cw1": u(ks[0], (3, 3, 3, 128), 3 * 3 * 3),      # HWIO
        "cb1": u(ks[1], (128,), 3 * 3 * 3),
        "cw2": u(ks[2], (3, 3, 128, 128), 3 * 3 * 128),
        "cb2": u(ks[3], (128,), 3 * 3 * 128),
        "fw1": u(ks[4], (128, 512), 128),
        "fb1": u(ks[5], (512,), 128),
        "fw2": u(ks[6], (512, 10), 512),
        "fb2": u(ks[7], (10,), 512),
    }


# -----------------------------------------------------------------------------
# Pure-JAX reference for validation
# -----------------------------------------------------------------------------
def reference_forward(x_nchw, params):
    x = jnp.transpose(x_nchw, (0, 2, 3, 1)).astype(jnp.float32)

    def conv(v, w, b):
        y = jax.lax.conv_general_dilated(
            v, w, window_strides=(1, 1), padding="VALID",
            dimension_numbers=("NHWC", "HWIO", "NHWC"),
            precision=jax.lax.Precision.HIGHEST)
        return y + b

    def lrelu(v, s):
        return jnp.where(v > 0, v, s * v)

    def maxpool(v):
        return jax.lax.reduce_window(v, -jnp.inf, jax.lax.max,
                                     (1, 2, 2, 1), (1, 2, 2, 1), "VALID")

    x = maxpool(lrelu(conv(x, params["cw1"], params["cb1"]), 0.02))
    x = maxpool(lrelu(conv(x, params["cw2"], params["cb2"]), 0.025))
    x = jnp.mean(x, axis=(1, 2))                     # AdaptiveAvgPool((1,1)) + Flatten
    x = lrelu(x @ params["fw1"] + params["fb1"], 0.02)
    return x @ params["fw2"] + params["fb2"]


if __name__ == "__main__":
    key = jax.random.PRNGKey(0)
    pk, xk = jax.random.split(key)
    params = init_params(pk)

    # Small input consistent with the module: NCHW, 3 input channels.
    x = jax.random.normal(xk, (2, 3, 16, 16), dtype=jnp.float32)

    out = jax.jit(model_zero_one_forward)(x, params)
    out = jax.block_until_ready(out)
    assert out.shape == (2, 10)

    ref = reference_forward(x, params)
    np.testing.assert_allclose(np.asarray(out), np.asarray(ref),
                               rtol=2e-3, atol=2e-3)
    print("KERNEL_OK")
</pallas_src>

<mosaic_0001>
module attributes {stable_mosaic.version = 11 : i64} {
  func.func @_fused_forward_kernel(%arg0: i32, %arg1: memref<1x196x27xf32, #tpu.memory_space<vmem>>, %arg2: memref<27x128xf32, #tpu.memory_space<vmem>>, %arg3: memref<1x128xf32, #tpu.memory_space<vmem>>, %arg4: memref<9x128x128xf32, #tpu.memory_space<vmem>>, %arg5: memref<1x128xf32, #tpu.memory_space<vmem>>, %arg6: memref<128x512xf32, #tpu.memory_space<vmem>>, %arg7: memref<1x512xf32, #tpu.memory_space<vmem>>, %arg8: memref<512x10xf32, #tpu.memory_space<vmem>>, %arg9: memref<1x10xf32, #tpu.memory_space<vmem>>, %arg10: memref<1x1x10xf32, #tpu.memory_space<vmem>>) attributes {dimension_semantics = [#tpu.dimension_semantics<parallel>], iteration_bounds = array<i64: 2>, scalar_prefetch = 0 : i64, scratch_operands = 0 : i64, tpu.core_type = #tpu.core_type<tc>, window_params = [{transform_indices = @transform_0, window_bounds = array<i64: 1, 196, 27>}, {pipeline_mode = #tpu.pipeline_mode<synchronous>, transform_indices = @transform_1, window_bounds = array<i64: 27, 128>}, {pipeline_mode = #tpu.pipeline_mode<synchronous>, transform_indices = @transform_2, window_bounds = array<i64: 1, 128>}, {pipeline_mode = #tpu.pipeline_mode<synchronous>, transform_indices = @transform_3, window_bounds = array<i64: 9, 128, 128>}, {pipeline_mode = #tpu.pipeline_mode<synchronous>, transform_indices = @transform_4, window_bounds = array<i64: 1, 128>}, {pipeline_mode = #tpu.pipeline_mode<synchronous>, transform_indices = @transform_5, window_bounds = array<i64: 128, 512>}, {pipeline_mode = #tpu.pipeline_mode<synchronous>, transform_indices = @transform_6, window_bounds = array<i64: 1, 512>}, {pipeline_mode = #tpu.pipeline_mode<synchronous>, transform_indices = @transform_7, window_bounds = array<i64: 512, 10>}, {pipeline_mode = #tpu.pipeline_mode<synchronous>, transform_indices = @transform_8, window_bounds = array<i64: 1, 10>}, {transform_indices = @transform_9, window_bounds = array<i64: 1, 1, 10>}]} {
    %c0 = arith.constant 0 : index
    %c0_0 = arith.constant 0 : index
    %0 = vector.load %arg2[%c0, %c0_0] : memref<27x128xf32, #tpu.memory_space<vmem>>, vector<27x128xf32>
    %c0_1 = arith.constant 0 : index
    %c0_2 = arith.constant 0 : index
    %1 = vector.load %arg3[%c0_1, %c0_2] : memref<1x128xf32, #tpu.memory_space<vmem>>, vector<1x128xf32>
    %2 = vector.shape_cast %1 : vector<1x128xf32> to vector<1x128xf32>
    %3 = vector.broadcast %2 : vector<1x128xf32> to vector<49x128xf32>
    %c0_3 = arith.constant 0 : index
    %c0_4 = arith.constant 0 : index
    %4 = vector.load %arg5[%c0_3, %c0_4] : memref<1x128xf32, #tpu.memory_space<vmem>>, vector<1x128xf32>
    %c0_5 = arith.constant 0 : index
    %c0_6 = arith.constant 0 : index
    %c0_7 = arith.constant 0 : index
    %5 = vector.load %arg1[%c0_5, %c0_6, %c0_7] : memref<1x196x27xf32, #tpu.memory_space<vmem>>, vector<1x196x27xf32>
    %6 = vector.shape_cast %5 : vector<1x196x27xf32> to vector<196x27xf32>
    %cst = arith.constant dense<0.000000e+00> : vector<196x128xf32>
    %7 = tpu.matmul %6, %0, %cst {dimension_numbers = #tpu.dot_dimension_numbers<[1], [0], [0], [1], [0, 0, 1, 1], [], []>} : vector<196x27xf32>, vector<27x128xf32>, vector<196x128xf32> -> vector<196x128xf32>
    %8 = vector.extract_strided_slice %7 {offsets = [0, 0], sizes = [49, 128], strides = [1, 1]} : vector<196x128xf32> to vector<49x128xf32>
    %9 = vector.extract_strided_slice %7 {offsets = [49, 0], sizes = [49, 128], strides = [1, 1]} : vector<196x128xf32> to vector<49x128xf32>
    %10 = arith.maximumf %8, %9 : vector<49x128xf32>
    %11 = vector.extract_strided_slice %7 {offsets = [98, 0], sizes = [49, 128], strides = [1, 1]} : vector<196x128xf32> to vector<49x128xf32>
    %12 = vector.extract_strided_slice %7 {offsets = [147, 0], sizes = [49, 128], strides = [1, 1]} : vector<196x128xf32> to vector<49x128xf32>
    %13 = arith.maximumf %11, %12 : vector<49x128xf32>
    %14 = arith.maximumf %10, %13 : vector<49x128xf32>
    %15 = arith.addf %14, %3 : vector<49x128xf32>
    %cst_8 = arith.constant 0.000000e+00 : f32
    %16 = vector.broadcast %cst_8 : f32 to vector<49x128xf32>
    %17 = arith.cmpf ogt, %15, %16 : vector<49x128xf32>
    %cst_9 = arith.constant 2.000000e-02 : f32
    %18 = vector.broadcast %cst_9 : f32 to vector<49x128xf32>
    %19 = arith.mulf %18, %15 : vector<49x128xf32>
    %20 = arith.select %17, %15, %19 : vector<49x128xi1>, vector<49x128xf32>
    %cst_10 = arith.constant 0.000000e+00 : f32
    %21 = vector.broadcast %cst_10 : f32 to vector<25x128xf32>
    %22 = vector.extract_strided_slice %20 {offsets = [0, 0], sizes = [5, 128], strides = [1, 1]} : vector<49x128xf32> to vector<5x128xf32>
    %23 = vector.extract_strided_slice %20 {offsets = [7, 0], sizes = [5, 128], strides = [1, 1]} : vector<49x128xf32> to vector<5x128xf32>
    %24 = vector.extract_strided_slice %20 {offsets = [14, 0], sizes = [5, 128], strides = [1, 1]} : vector<49x128xf32> to vector<5x128xf32>
    %25 = vector.extract_strided_slice %20 {offsets = [21, 0], sizes = [5, 128], strides = [1, 1]} : vector<49x128xf32> to vector<5x128xf32>
    %26 = vector.extract_strided_slice %20 {offsets = [28, 0], sizes = [5, 128], strides = [1, 1]} : vector<49x128xf32> to vector<5x128xf32>
    %27 = tpu.concatenate %22, %23, %24, %25, %26 in 0 : vector<5x128xf32>, vector<5x128xf32>, vector<5x128xf32>, vector<5x128xf32>, vector<5x128xf32> -> vector<25x128xf32>
    %c0_11 = arith.constant 0 : index
    %c0_12 = arith.constant 0 : index
    %c0_13 = arith.constant 0 : index
    %28 = vector.load %arg4[%c0_11, %c0_12, %c0_13] : memref<9x128x128xf32, #tpu.memory_space<vmem>>, vector<1x128x128xf32>
    %29 = vector.shape_cast %28 : vector<1x128x128xf32> to vector<128x128xf32>
    %cst_14 = arith.constant dense<0.000000e+00> : vector<25x128xf32>
    %30 = tpu.matmul %27, %29, %cst_14 {dimension_numbers = #tpu.dot_dimension_numbers<[1], [0], [0], [1], [0, 0, 1, 1], [], []>} : vector<25x128xf32>, vector<128x128xf32>, vector<25x128xf32> -> vector<25x128xf32>
    %31 = arith.addf %21, %30 : vector<25x128xf32>
    %32 = vector.extract_strided_slice %20 {offsets = [1, 0], sizes = [5, 128], strides = [1, 1]} : vector<49x128xf32> to vector<5x128xf32>
    %33 = vector.extract_strided_slice %20 {offsets = [8, 0], sizes = [5, 128], strides = [1, 1]} : vector<49x128xf32> to vector<5x128xf32>
    %34 = vector.extract_strided_slice %20 {offsets = [15, 0], sizes = [5, 128], strides = [1, 1]} : vector<49x128xf32> to vector<5x128xf32>
    %35 = vector.extract_strided_slice %20 {offsets = [22, 0], sizes = [5, 128], strides = [1, 1]} : vector<49x128xf32> to vector<5x128xf32>
    %36 = vector.extract_strided_slice %20 {offsets = [29, 0], sizes = [5, 128], strides = [1, 1]} : vector<49x128xf32> to vector<5x128xf32>
    %37 = tpu.concatenate %32, %33, %34, %35, %36 in 0 : vector<5x128xf32>, vector<5x128xf32>, vector<5x128xf32>, vector<5x128xf32>, vector<5x128xf32> -> vector<25x128xf32>
    %c1 = arith.constant 1 : index
    %c0_15 = arith.constant 0 : index
    %c0_16 = arith.constant 0 : index
    %38 = vector.load %arg4[%c1, %c0_15, %c0_16] : memref<9x128x128xf32, #tpu.memory_space<vmem>>, vector<1x128x128xf32>
    %39 = vector.shape_cast %38 : vector<1x128x128xf32> to vector<128x128xf32>
    %cst_17 = arith.constant dense<0.000000e+00> : vector<25x128xf32>
    %40 = tpu.matmul %37, %39, %cst_17 {dimension_numbers = #tpu.dot_dimension_numbers<[1], [0], [0], [1], [0, 0, 1, 1], [], []>} : vector<25x128xf32>, vector<128x128xf32>, vector<25x128xf32> -> vector<25x128xf32>
    %41 = arith.addf %31, %40 : vector<25x128xf32>
    %42 = vector.extract_strided_slice %20 {offsets = [2, 0], sizes = [5, 128], strides = [1, 1]} : vector<49x128xf32> to vector<5x128xf32>
    %43 = vector.extract_strided_slice %20 {offsets = [9, 0], sizes = [5, 128], strides = [1, 1]} : vector<49x128xf32> to vector<5x128xf32>
    %44 = vector.extract_strided_slice %20 {offsets = [16, 0], sizes = [5, 128], strides = [1, 1]} : vector<49x128xf32> to vector<5x128xf32>
    %45 = vector.extract_strided_slice %20 {offsets = [23, 0], sizes = [5, 128], strides = [1, 1]} : vector<49x128xf32> to vector<5x128xf32>
    %46 = vector.extract_strided_slice %20 {offsets = [30, 0], sizes = [5, 128], strides = [1, 1]} : vector<49x128xf32> to vector<5x128xf32>
    %47 = tpu.concatenate %42, %43, %44, %45, %46 in 0 : vector<5x128xf32>, vector<5x128xf32>, vector<5x128xf32>, vector<5x128xf32>, vector<5x128xf32> -> vector<25x128xf32>
    %c2 = arith.constant 2 : index
    %c0_18 = arith.constant 0 : index
    %c0_19 = arith.constant 0 : index
    %48 = vector.load %arg4[%c2, %c0_18, %c0_19] : memref<9x128x128xf32, #tpu.memory_space<vmem>>, vector<1x128x128xf32>
    %49 = vector.shape_cast %48 : vector<1x128x128xf32> to vector<128x128xf32>
    %cst_20 = arith.constant dense<0.000000e+00> : vector<25x128xf32>
    %50 = tpu.matmul %47, %49, %cst_20 {dimension_numbers = #tpu.dot_dimension_numbers<[1], [0], [0], [1], [0, 0, 1, 1], [], []>} : vector<25x128xf32>, vector<128x128xf32>, vector<25x128xf32> -> vector<25x128xf32>
    %51 = arith.addf %41, %50 : vector<25x128xf32>
    %52 = vector.extract_strided_slice %20 {offsets = [7, 0], sizes = [5, 128], strides = [1, 1]} : vector<49x128xf32> to vector<5x128xf32>
    %53 = vector.extract_strided_slice %20 {offsets = [14, 0], sizes = [5, 128], strides = [1, 1]} : vector<49x128xf32> to vector<5x128xf32>
    %54 = vector.extract_strided_slice %20 {offsets = [21, 0], sizes = [5, 128], strides = [1, 1]} : vector<49x128xf32> to vector<5x128xf32>
    %55 = vector.extract_strided_slice %20 {offsets = [28, 0], sizes = [5, 128], strides = [1, 1]} : vector<49x128xf32> to vector<5x128xf32>
    %56 = vector.extract_strided_slice %20 {offsets = [35, 0], sizes = [5, 128], strides = [1, 1]} : vector<49x128xf32> to vector<5x128xf32>
    %57 = tpu.concatenate %52, %53, %54, %55, %56 in 0 : vector<5x128xf32>, vector<5x128xf32>, vector<5x128xf32>, vector<5x128xf32>, vector<5x128xf32> -> vector<25x128xf32>
    %c3 = arith.constant 3 : index
    %c0_21 = arith.constant 0 : index
    %c0_22 = arith.constant 0 : index
    %58 = vector.load %arg4[%c3, %c0_21, %c0_22] : memref<9x128x128xf32, #tpu.memory_space<vmem>>, vector<1x128x128xf32>
    %59 = vector.shape_cast %58 : vector<1x128x128xf32> to vector<128x128xf32>
    %cst_23 = arith.constant dense<0.000000e+00> : vector<25x128xf32>
    %60 = tpu.matmul %57, %59, %cst_23 {dimension_numbers = #tpu.dot_dimension_numbers<[1], [0], [0], [1], [0, 0, 1, 1], [], []>} : vector<25x128xf32>, vector<128x128xf32>, vector<25x128xf32> -> vector<25x128xf32>
    %61 = arith.addf %51, %60 : vector<25x128xf32>
    %62 = vector.extract_strided_slice %20 {offsets = [8, 0], sizes = [5, 128], strides = [1, 1]} : vector<49x128xf32> to vector<5x128xf32>
    %63 = vector.extract_strided_slice %20 {offsets = [15, 0], sizes = [5, 128], strides = [1, 1]} : vector<49x128xf32> to vector<5x128xf32>
    %64 = vector.extract_strided_slice %20 {offsets = [22, 0], sizes = [5, 128], strides = [1, 1]} : vector<49x128xf32> to vector<5x128xf32>
    %65 = vector.extract_strided_slice %20 {offsets = [29, 0], sizes = [5, 128], strides = [1, 1]} : vector<49x128xf32> to vector<5x128xf32>
    %66 = vector.extract_strided_slice %20 {offsets = [36, 0], sizes = [5, 128], strides = [1, 1]} : vector<49x128xf32> to vector<5x128xf32>
    %67 = tpu.concatenate %62, %63, %64, %65, %66 in 0 : vector<5x128xf32>, vector<5x128xf32>, vector<5x128xf32>, vector<5x128xf32>, vector<5x128xf32> -> vector<25x128xf32>
    %c4 = arith.constant 4 : index
    %c0_24 = arith.constant 0 : index
    %c0_25 = arith.constant 0 : index
    %68 = vector.load %arg4[%c4, %c0_24, %c0_25] : memref<9x128x128xf32, #tpu.memory_space<vmem>>, vector<1x128x128xf32>
    %69 = vector.shape_cast %68 : vector<1x128x128xf32> to vector<128x128xf32>
    %cst_26 = arith.constant dense<0.000000e+00> : vector<25x128xf32>
    %70 = tpu.matmul %67, %69, %cst_26 {dimension_numbers = #tpu.dot_dimension_numbers<[1], [0], [0], [1], [0, 0, 1, 1], [], []>} : vector<25x128xf32>, vector<128x128xf32>, vector<25x128xf32> -> vector<25x128xf32>
    %71 = arith.addf %61, %70 : vector<25x128xf32>
    %72 = vector.extract_strided_slice %20 {offsets = [9, 0], sizes = [5, 128], strides = [1, 1]} : vector<49x128xf32> to vector<5x128xf32>
    %73 = vector.extract_strided_slice %20 {offsets = [16, 0], sizes = [5, 128], strides = [1, 1]} : vector<49x128xf32> to vector<5x128xf32>
    %74 = vector.extract_strided_slice %20 {offsets = [23, 0], sizes = [5, 128], strides = [1, 1]} : vector<49x128xf32> to vector<5x128xf32>
    %75 = vector.extract_strided_slice %20 {offsets = [30, 0], sizes = [5, 128], strides = [1, 1]} : vector<49x128xf32> to vector<5x128xf32>
    %76 = vector.extract_strided_slice %20 {offsets = [37, 0], sizes = [5, 128], strides = [1, 1]} : vector<49x128xf32> to vector<5x128xf32>
    %77 = tpu.concatenate %72, %73, %74, %75, %76 in 0 : vector<5x128xf32>, vector<5x128xf32>, vector<5x128xf32>, vector<5x128xf32>, vector<5x128xf32> -> vector<25x128xf32>
    %c5 = arith.constant 5 : index
    %c0_27 = arith.constant 0 : index
    %c0_28 = arith.constant 0 : index
    %78 = vector.load %arg4[%c5, %c0_27, %c0_28] : memref<9x128x128xf32, #tpu.memory_space<vmem>>, vector<1x128x128xf32>
    %79 = vector.shape_cast %78 : vector<1x128x128xf32> to vector<128x128xf32>
    %cst_29 = arith.constant dense<0.000000e+00> : vector<25x128xf32>
    %80 = tpu.matmul %77, %79, %cst_29 {dimension_numbers = #tpu.dot_dimension_numbers<[1], [0], [0], [1], [0, 0, 1, 1], [], []>} : vector<25x128xf32>, vector<128x128xf32>, vector<25x128xf32> -> vector<25x128xf32>
    %81 = arith.addf %71, %80 : vector<25x128xf32>
    %82 = vector.extract_strided_slice %20 {offsets = [14, 0], sizes = [5, 128], strides = [1, 1]} : vector<49x128xf32> to vector<5x128xf32>
    %83 = vector.extract_strided_slice %20 {offsets = [21, 0], sizes = [5, 128], strides = [1, 1]} : vector<49x128xf32> to vector<5x128xf32>
    %84 = vector.extract_strided_slice %20 {offsets = [28, 0], sizes = [5, 128], strides = [1, 1]} : vector<49x128xf32> to vector<5x128xf32>
    %85 = vector.extract_strided_slice %20 {offsets = [35, 0], sizes = [5, 128], strides = [1, 1]} : vector<49x128xf32> to vector<5x128xf32>
    %86 = vector.extract_strided_slice %20 {offsets = [42, 0], sizes = [5, 128], strides = [1, 1]} : vector<49x128xf32> to vector<5x128xf32>
    %87 = tpu.concatenate %82, %83, %84, %85, %86 in 0 : vector<5x128xf32>, vector<5x128xf32>, vector<5x128xf32>, vector<5x128xf32>, vector<5x128xf32> -> vector<25x128xf32>
    %c6 = arith.constant 6 : index
    %c0_30 = arith.constant 0 : index
    %c0_31 = arith.constant 0 : index
    %88 = vector.load %arg4[%c6, %c0_30, %c0_31] : memref<9x128x128xf32, #tpu.memory_space<vmem>>, vector<1x128x128xf32>
    %89 = vector.shape_cast %88 : vector<1x128x128xf32> to vector<128x128xf32>
    %cst_32 = arith.constant dense<0.000000e+00> : vector<25x128xf32>
    %90 = tpu.matmul %87, %89, %cst_32 {dimension_numbers = #tpu.dot_dimension_numbers<[1], [0], [0], [1], [0, 0, 1, 1], [], []>} : vector<25x128xf32>, vector<128x128xf32>, vector<25x128xf32> -> vector<25x128xf32>
    %91 = arith.addf %81, %90 : vector<25x128xf32>
    %92 = vector.extract_strided_slice %20 {offsets = [15, 0], sizes = [5, 128], strides = [1, 1]} : vector<49x128xf32> to vector<5x128xf32>
    %93 = vector.extract_strided_slice %20 {offsets = [22, 0], sizes = [5, 128], strides = [1, 1]} : vector<49x128xf32> to vector<5x128xf32>
    %94 = vector.extract_strided_slice %20 {offsets = [29, 0], sizes = [5, 128], strides = [1, 1]} : vector<49x128xf32> to vector<5x128xf32>
    %95 = vector.extract_strided_slice %20 {offsets = [36, 0], sizes = [5, 128], strides = [1, 1]} : vector<49x128xf32> to vector<5x128xf32>
    %96 = vector.extract_strided_slice %20 {offsets = [43, 0], sizes = [5, 128], strides = [1, 1]} : vector<49x128xf32> to vector<5x128xf32>
    %97 = tpu.concatenate %92, %93, %94, %95, %96 in 0 : vector<5x128xf32>, vector<5x128xf32>, vector<5x128xf32>, vector<5x128xf32>, vector<5x128xf32> -> vector<25x128xf32>
    %c7 = arith.constant 7 : index
    %c0_33 = arith.constant 0 : index
    %c0_34 = arith.constant 0 : index
    %98 = vector.load %arg4[%c7, %c0_33, %c0_34] : memref<9x128x128xf32, #tpu.memory_space<vmem>>, vector<1x128x128xf32>
    %99 = vector.shape_cast %98 : vector<1x128x128xf32> to vector<128x128xf32>
    %cst_35 = arith.constant dense<0.000000e+00> : vector<25x128xf32>
    %100 = tpu.matmul %97, %99, %cst_35 {dimension_numbers = #tpu.dot_dimension_numbers<[1], [0], [0], [1], [0, 0, 1, 1], [], []>} : vector<25x128xf32>, vector<128x128xf32>, vector<25x128xf32> -> vector<25x128xf32>
    %101 = arith.addf %91, %100 : vector<25x128xf32>
    %102 = vector.extract_strided_slice %20 {offsets = [16, 0], sizes = [5, 128], strides = [1, 1]} : vector<49x128xf32> to vector<5x128xf32>
    %103 = vector.extract_strided_slice %20 {offsets = [23, 0], sizes = [5, 128], strides = [1, 1]} : vector<49x128xf32> to vector<5x128xf32>
    %104 = vector.extract_strided_slice %20 {offsets = [30, 0], sizes = [5, 128], strides = [1, 1]} : vector<49x128xf32> to vector<5x128xf32>
    %105 = vector.extract_strided_slice %20 {offsets = [37, 0], sizes = [5, 128], strides = [1, 1]} : vector<49x128xf32> to vector<5x128xf32>
    %106 = vector.extract_strided_slice %20 {offsets = [44, 0], sizes = [5, 128], strides = [1, 1]} : vector<49x128xf32> to vector<5x128xf32>
    %107 = tpu.concatenate %102, %103, %104, %105, %106 in 0 : vector<5x128xf32>, vector<5x128xf32>, vector<5x128xf32>, vector<5x128xf32>, vector<5x128xf32> -> vector<25x128xf32>
    %c8 = arith.constant 8 : index
    %c0_36 = arith.constant 0 : index
    %c0_37 = arith.constant 0 : index
    %108 = vector.load %arg4[%c8, %c0_36, %c0_37] : memref<9x128x128xf32, #tpu.memory_space<vmem>>, vector<1x128x128xf32>
    %109 = vector.shape_cast %108 : vector<1x128x128xf32> to vector<128x128xf32>
    %cst_38 = arith.constant dense<0.000000e+00> : vector<25x128xf32>
    %110 = tpu.matmul %107, %109, %cst_38 {dimension_numbers = #tpu.dot_dimension_numbers<[1], [0], [0], [1], [0, 0, 1, 1], [], []>} : vector<25x128xf32>, vector<128x128xf32>, vector<25x128xf32> -> vector<25x128xf32>
    %111 = arith.addf %101, %110 : vector<25x128xf32>
    %cst_39 = arith.constant 0.000000e+00 : f32
    %112 = vector.broadcast %cst_39 : f32 to vector<1x128xf32>
    %113 = vector.extract_strided_slice %111 {offsets = [0, 0], sizes = [2, 128], strides = [1, 1]} : vector<25x128xf32> to vector<2x128xf32>
    %114 = vector.extract_strided_slice %111 {offsets = [5, 0], sizes = [2, 128], strides = [1, 1]} : vector<25x128xf32> to vector<2x128xf32>
    %115 = arith.maximumf %113, %114 : vector<2x128xf32>
    %116 = vector.extract_strided_slice %115 {offsets = [0, 0], sizes = [1, 128], strides = [1, 1]} : vector<2x128xf32> to vector<1x128xf32>
    %117 = vector.extract_strided_slice %115 {offsets = [1, 0], sizes = [1, 128], strides = [1, 1]} : vector<2x128xf32> to vector<1x128xf32>
    %118 = arith.maximumf %116, %117 : vector<1x128xf32>
    %119 = arith.addf %118, %4 : vector<1x128xf32>
    %cst_40 = arith.constant 0.000000e+00 : f32
    %120 = vector.broadcast %cst_40 : f32 to vector<1x128xf32>
    %121 = arith.cmpf ogt, %119, %120 : vector<1x128xf32>
    %cst_41 = arith.constant 2.500000e-02 : f32
    %122 = vector.broadcast %cst_41 : f32 to vector<1x128xf32>
    %123 = arith.mulf %122, %119 : vector<1x128xf32>
    %124 = arith.select %121, %119, %123 : vector<1x128xi1>, vector<1x128xf32>
    %125 = arith.addf %112, %124 : vector<1x128xf32>
    %126 = vector.extract_strided_slice %111 {offsets = [2, 0], sizes = [2, 128], strides = [1, 1]} : vector<25x128xf32> to vector<2x128xf32>
    %127 = vector.extract_strided_slice %111 {offsets = [7, 0], sizes = [2, 128], strides = [1, 1]} : vector<25x128xf32> to vector<2x128xf32>
    %128 = arith.maximumf %126, %127 : vector<2x128xf32>
    %129 = vector.extract_strided_slice %128 {offsets = [0, 0], sizes = [1, 128], strides = [1, 1]} : vector<2x128xf32> to vector<1x128xf32>
    %130 = vector.extract_strided_slice %128 {offsets = [1, 0], sizes = [1, 128], strides = [1, 1]} : vector<2x128xf32> to vector<1x128xf32>
    %131 = arith.maximumf %129, %130 : vector<1x128xf32>
    %132 = arith.addf %131, %4 : vector<1x128xf32>
    %cst_42 = arith.constant 0.000000e+00 : f32
    %133 = vector.broadcast %cst_42 : f32 to vector<1x128xf32>
    %134 = arith.cmpf ogt, %132, %133 : vector<1x128xf32>
    %cst_43 = arith.constant 2.500000e-02 : f32
    %135 = vector.broadcast %cst_43 : f32 to vector<1x128xf32>
    %136 = arith.mulf %135, %132 : vector<1x128xf32>
    %137 = arith.select %134, %132, %136 : vector<1x128xi1>, vector<1x128xf32>
    %138 = arith.addf %125, %137 : vector<1x128xf32>
    %139 = vector.extract_strided_slice %111 {offsets = [10, 0], sizes = [2, 128], strides = [1, 1]} : vector<25x128xf32> to vector<2x128xf32>
    %140 = vector.extract_strided_slice %111 {offsets = [15, 0], sizes = [2, 128], strides = [1, 1]} : vector<25x128xf32> to vector<2x128xf32>
    %141 = arith.maximumf %139, %140 : vector<2x128xf32>
    %142 = vector.extract_strided_slice %141 {offsets = [0, 0], sizes = [1, 128], strides = [1, 1]} : vector<2x128xf32> to vector<1x128xf32>
    %143 = vector.extract_strided_slice %141 {offsets = [1, 0], sizes = [1, 128], strides = [1, 1]} : vector<2x128xf32> to vector<1x128xf32>
    %144 = arith.maximumf %142, %143 : vector<1x128xf32>
    %145 = arith.addf %144, %4 : vector<1x128xf32>
    %cst_44 = arith.constant 0.000000e+00 : f32
    %146 = vector.broadcast %cst_44 : f32 to vector<1x128xf32>
    %147 = arith.cmpf ogt, %145, %146 : vector<1x128xf32>
    %cst_45 = arith.constant 2.500000e-02 : f32
    %148 = vector.broadcast %cst_45 : f32 to vector<1x128xf32>
    %149 = arith.mulf %148, %145 : vector<1x128xf32>
    %150 = arith.select %147, %145, %149 : vector<1x128xi1>, vector<1x128xf32>
    %151 = arith.addf %138, %150 : vector<1x128xf32>
    %152 = vector.extract_strided_slice %111 {offsets = [12, 0], sizes = [2, 128], strides = [1, 1]} : vector<25x128xf32> to vector<2x128xf32>
    %153 = vector.extract_strided_slice %111 {offsets = [17, 0], sizes = [2, 128], strides = [1, 1]} : vector<25x128xf32> to vector<2x128xf32>
    %154 = arith.maximumf %152, %153 : vector<2x128xf32>
    %155 = vector.extract_strided_slice %154 {offsets = [0, 0], sizes = [1, 128], strides = [1, 1]} : vector<2x128xf32> to vector<1x128xf32>
    %156 = vector.extract_strided_slice %154 {offsets = [1, 0], sizes = [1, 128], strides = [1, 1]} : vector<2x128xf32> to vector<1x128xf32>
    %157 = arith.maximumf %155, %156 : vector<1x128xf32>
    %158 = arith.addf %157, %4 : vector<1x128xf32>
    %cst_46 = arith.constant 0.000000e+00 : f32
    %159 = vector.broadcast %cst_46 : f32 to vector<1x128xf32>
    %160 = arith.cmpf ogt, %158, %159 : vector<1x128xf32>
    %cst_47 = arith.constant 2.500000e-02 : f32
    %161 = vector.broadcast %cst_47 : f32 to vector<1x128xf32>
    %162 = arith.mulf %161, %158 : vector<1x128xf32>
    %163 = arith.select %160, %158, %162 : vector<1x128xi1>, vector<1x128xf32>
    %164 = arith.addf %151, %163 : vector<1x128xf32>
    %cst_48 = arith.constant 2.500000e-01 : f32
    %165 = vector.broadcast %cst_48 : f32 to vector<1x128xf32>
    %166 = arith.mulf %164, %165 : vector<1x128xf32>
    %c0_49 = arith.constant 0 : index
    %c0_50 = arith.constant 0 : index
    %167 = vector.load %arg6[%c0_49, %c0_50] : memref<128x512xf32, #tpu.memory_space<vmem>>, vector<128x512xf32>
    %cst_51 = arith.constant dense<0.000000e+00> : vector<1x512xf32>
    %168 = tpu.matmul %166, %167, %cst_51 {dimension_numbers = #tpu.dot_dimension_numbers<[1], [0], [0], [1], [0, 0, 1, 1], [], []>} : vector<1x128xf32>, vector<128x512xf32>, vector<1x512xf32> -> vector<1x512xf32>
    %c0_52 = arith.constant 0 : index
    %c0_53 = arith.constant 0 : index
    %169 = vector.load %arg7[%c0_52, %c0_53] : memref<1x512xf32, #tpu.memory_space<vmem>>, vector<1x512xf32>
    %170 = arith.addf %168, %169 : vector<1x512xf32>
    %cst_54 = arith.constant 0.000000e+00 : f32
    %171 = vector.broadcast %cst_54 : f32 to vector<1x512xf32>
    %172 = arith.cmpf ogt, %170, %171 : vector<1x512xf32>
    %cst_55 = arith.constant 2.000000e-02 : f32
    %173 = vector.broadcast %cst_55 : f32 to vector<1x512xf32>
    %174 = arith.mulf %173, %170 : vector<1x512xf32>
    %175 = arith.select %172, %170, %174 : vector<1x512xi1>, vector<1x512xf32>
    %c0_56 = arith.constant 0 : index
    %c0_57 = arith.constant 0 : index
    %176 = vector.load %arg8[%c0_56, %c0_57] : memref<512x10xf32, #tpu.memory_space<vmem>>, vector<512x10xf32>
    %cst_58 = arith.constant dense<0.000000e+00> : vector<1x10xf32>
    %177 = tpu.matmul %175, %176, %cst_58 {dimension_numbers = #tpu.dot_dimension_numbers<[1], [0], [0], [1], [0, 0, 1, 1], [], []>} : vector<1x512xf32>, vector<512x10xf32>, vector<1x10xf32> -> vector<1x10xf32>
    %c0_59 = arith.constant 0 : index
    %c0_60 = arith.constant 0 : index
    %178 = vector.load %arg9[%c0_59, %c0_60] : memref<1x10xf32, #tpu.memory_space<vmem>>, vector<1x10xf32>
    %179 = arith.addf %177, %178 : vector<1x10xf32>
    %c0_61 = arith.constant 0 : index
    %c0_62 = arith.constant 0 : index
    %c0_63 = arith.constant 0 : index
    %180 = vector.load %arg10[%c0_61, %c0_62, %c0_63] : memref<1x1x10xf32, #tpu.memory_space<vmem>>, vector<1x1x10xf32>
    %181 = vector.shape_cast %180 : vector<1x1x10xf32> to vector<1x10xf32>
    %182 = vector.shape_cast %179 : vector<1x10xf32> to vector<1x1x10xf32>
    tpu.vector_store %arg10[%c0_61, %c0_62, %c0_63], %182 {strides = array<i32>} : memref<1x1x10xf32, #tpu.memory_space<vmem>>, vector<1x1x10xf32>,
    return
  }
  func.func @transform_0(%arg0: i32) -> (i32, i32, i32) {
    %c0_i32 = arith.constant 0 : i32
    %c0_i32_0 = arith.constant 0 : i32
    %c0_i32_1 = arith.constant 0 : i32
    return %arg0, %c0_i32, %c0_i32_0 : i32, i32, i32
  }
  func.func @transform_1(%arg0: i32) -> (i32, i32) {
    %c0_i32 = arith.constant 0 : i32
    %c0_i32_0 = arith.constant 0 : i32
    %c0_i32_1 = arith.constant 0 : i32
    return %c0_i32, %c0_i32_0 : i32, i32
  }
  func.func @transform_2(%arg0: i32) -> (i32, i32) {
    %c0_i32 = arith.constant 0 : i32
    %c0_i32_0 = arith.constant 0 : i32
    %c0_i32_1 = arith.constant 0 : i32
    return %c0_i32, %c0_i32_0 : i32, i32
  }
  func.func @transform_3(%arg0: i32) -> (i32, i32, i32) {
    %c0_i32 = arith.constant 0 : i32
    %c0_i32_0 = arith.constant 0 : i32
    %c0_i32_1 = arith.constant 0 : i32
    %c0_i32_2 = arith.constant 0 : i32
    return %c0_i32, %c0_i32_0, %c0_i32_1 : i32, i32, i32
  }
  func.func @transform_4(%arg0: i32) -> (i32, i32) {
    %c0_i32 = arith.constant 0 : i32
    %c0_i32_0 = arith.constant 0 : i32
    %c0_i32_1 = arith.constant 0 : i32
    return %c0_i32, %c0_i32_0 : i32, i32
  }
  func.func @transform_5(%arg0: i32) -> (i32, i32) {
    %c0_i32 = arith.constant 0 : i32
    %c0_i32_0 = arith.constant 0 : i32
    %c0_i32_1 = arith.constant 0 : i32
    return %c0_i32, %c0_i32_0 : i32, i32
  }
  func.func @transform_6(%arg0: i32) -> (i32, i32) {
    %c0_i32 = arith.constant 0 : i32
    %c0_i32_0 = arith.constant 0 : i32
    %c0_i32_1 = arith.constant 0 : i32
    return %c0_i32, %c0_i32_0 : i32, i32
  }
  func.func @transform_7(%arg0: i32) -> (i32, i32) {
    %c0_i32 = arith.constant 0 : i32
    %c0_i32_0 = arith.constant 0 : i32
    %c0_i32_1 = arith.constant 0 : i32
    return %c0_i32, %c0_i32_0 : i32, i32
  }
  func.func @transform_8(%arg0: i32) -> (i32, i32) {
    %c0_i32 = arith.constant 0 : i32
    %c0_i32_0 = arith.constant 0 : i32
    %c0_i32_1 = arith.constant 0 : i32
    return %c0_i32, %c0_i32_0 : i32, i32
  }
  func.func @transform_9(%arg0: i32) -> (i32, i32, i32) {
    %c0_i32 = arith.constant 0 : i32
    %c0_i32_0 = arith.constant 0 : i32
    %c0_i32_1 = arith.constant 0 : i32
    return %arg0, %c0_i32, %c0_i32_0 : i32, i32, i32
  }
}

</mosaic_0001>

<bundles_post_ra>
// kernel: model_zero_one_forward.1
= control target key start
LH: loop header
LB: loop body
LE: loop exit
PB: predicated region body
PF: predicated region fallthrough
CT: control target
= control target key end

     0   :  { %14 = vsyncpa [#allocation3], 0  ;;  %s3427_s0 = inlined_call_operand.vmem [shape: f32[2,196,27], index: 0, kind: input, shape index: {}]   ;;  %s3428_s1 = inlined_call_operand.vmem [shape: f32[27,128], index: 1, kind: input, shape index: {}]   ;;  %s3429_s2 = inlined_call_operand.vmem [shape: f32[1,128], index: 2, kind: input, shape index: {}]   ;;  %s3430_s3 = inlined_call_operand.vmem [shape: f32[9,128,128], index: 3, kind: input, shape index: {}]   ;;  %s3431_s4 = inlined_call_operand.vmem [shape: f32[1,128], index: 4, kind: input, shape index: {}]   ;;  %s3432_s5 = inlined_call_operand.vmem [shape: f32[128,512], index: 5, kind: input, shape index: {}]   ;;  %s3433_s6 = inlined_call_operand.vmem [shape: f32[1,512], index: 6, kind: input, shape index: {}]   ;;  %s3434_s7 = inlined_call_operand.vmem [shape: f32[512,10], index: 7, kind: input, shape index: {}]   ;;  %s3435_s8 = inlined_call_operand.vmem [shape: f32[1,10], index: 8, kind: input, shape index: {}]   ;;  %s3436_s9 = inlined_call_operand.hbm [shape: f32[2,1,10], index: 9, kind: output, shape index: {}]  }
   0x1   :  { %16 = vsyncpa [#allocation3 + $0x1], 0  ;;  %s2012_s30 = smov 0   ;;  %s2014_s10 = smov 0  }
   0x2   :  { %s2016_s11 = smov 0   ;;  %s2018_s12 = smov 0  }
   0x3 LB: > { %s2033_s13 = sadd.s32 4294967295, %s1960_s12   ;;  %s1695_s14 = sadd.s32 4294967294, %s1960_s12   ;;  %s1960_s12 = sphi %s2018_s12, %s3442_s12   ;;  %s1956_s11 = sphi %s2016_s11, %s3441_s11   ;;  %s1952_s10 = sphi %s2014_s10, %s3440_s10   ;;  %s1948_s30 = sphi %s2012_s30, %s3439_s30  }
   0x4   : > { %s2037_s15 = sadd.s32 1, %s1960_s12   ;;  %s223_s16 = sadd.s32 1, %s1956_s11 }
   0x5   : > { %s220_s17 = ssub.s32 %s1960_s12, %s2037_s15  ;;  %p233_p0 = scmp.ne.s32.totalorder %s1956_s11, %s1952_s10 }
   0x6   : > { %p221_p1 = scmp.eq.s32.totalorder %s220_s17, 0  ;;  %p234_p2 = scmp.eq.s32.totalorder %s2033_s13, 1 }
   0x7   : > { %p239_p3 = scmp.ne.s32.totalorder %s1952_s10, %s1948_s30  ;;  %p240_p4 = scmp.eq.s32.totalorder %s1695_s14, 1 }
   0x8   : > { %s2048_s18 = scalar_select %p221_p1, %s1956_s11, %s223_s16  }
   0x9   : > { %p2050_p5 = por %p234_p2, %p233_p0  ;;  %p2054_p6 = por %p240_p4, %p239_p3 }
   0xa   : > { %p1698_p7 = scmp.ge.s32.totalorder %s1960_s12, 1  ;;  %p290_p8 = scmp.lt.s32.totalorder %s1960_s12, 3 }
   0xc   : > { %p291_p9 = pnand %p1698_p7, %p290_p8 }
   0xd   : > { %p325_p10 = scmp.lt.s32.totalorder (!%p291_p9), %s2033_s13, 1  ;;  %s323_s24 = sand.u32 (!%p291_p9), 1, %s1952_s10  }
   0xe   : > { %294 = sbr.rel (%p291_p9) target bundleno = 862 (0x35e), region = 56  ;;  %s324_s28 = scalar_lea.vmem (!%p291_p9), [#allocation2], %s323_s24 }
   0xf   : > { %s1638_s29 = sshll.u32 (!%p291_p9), %s324_s28, 4  ;;  %s1628_s16 = scalar_lea.sflag (!%p291_p9), [#allocation3], %s323_s24  ;;  %s1639_s29 = int_to_ptr.vmem [resolvable:$true] %s1638_s29 }
  0x10   : > { %s1918_s23 = scalar_lea.hbm (!%p291_p9), %s3436_s9, 2 }
  0x13   : > { %v333_v0 = vld [vmem:[%s3428_s1 + $0x18] sm:$0x7]  ;;  %vm440_vm0 = vcmask 1042432   ;;  %v332_v1 = vld [vmem:[%s3428_s1 + $0x10] sm:$0xff]  ;;  %v331_v2 = vld [vmem:[%s3428_s1 + $0x8] sm:$0xff]  ;;  %s326_s27 = scalar_select %p325_p10, %s2033_s13, 1 }
  0x14   : > { %1700 = vmatpush.msk.msra.mxu0 %vm440_vm0, %v333_v0  ;;  %v330_v3 = vld [vmem:[%s3428_s1] sm:$0xff]  ;;  %vm364_vm1 = vcmask 220160   ;;  %vm543_vm2 = vcmask 1046528   ;;  %vm612_vm3 = vcmask 1045504   ;;  %vm688_vm6 = vcmask 1044480  }
  0x15   : > { %s1856_s14 = smul.u32 200, %s326_s27  ;;  %vm717_vm7 = vcmask 1040384   ;;  %vm682_vm9 = vcmask 1041408   ;;  %vm676_vm10 = vcmask 1043456   ;;  %s1636_s27 = scalar_lea.hbm %s3436_s9, %s2033_s13 }
  0x16   : > { %457 = vmatpush.msra.mxu0 %v332_v1  ;;  %v1741_v1 = vld [vmem:[%s3430_s3 + $0xf8] sm:$0xff] }
  0x17   : > { %s2078_s21 = scalar_lea.vmem %s3427_s0, %s1856_s14  ;;  %750 = vmatpush.msra.mxu1 %v1741_v1  ;;  %v696_v1 = vld [vmem:[%s3430_s3 + $0x18] sm:$0xff]  ;;  %s1640_s14 = sshll.u32 %s1636_s27, 4  ;;  %s1641_s14 = int_to_ptr.hbm [resolvable:$true] %s1640_s14 }
  0x18   : > { %458 = vmatpush.msra.mxu0 %v331_v2  ;;  %v339_v4 = vld [vmem:[%s2078_s21] sm:$0xff]  ;;  %v340_v5 = vld [vmem:[%s2078_s21 + $0x8] sm:$0xff]  ;;  %v341_v6 = vld [vmem:[%s2078_s21 + $0x10] sm:$0xff]  ;;  %s1912_s17 = sshra.s32 %s1641_s14, 4  ;;  %s1913_s17 = int_to_ptr.hbm [resolvable:$true] %s1912_s17 }
  0x19   : > { %v342_v7 = vld [vmem:[%s2078_s21 + $0x18] sm:$0xff]  ;;  %v343_v8 = vld [vmem:[%s2078_s21 + $0x20] sm:$0xff]  ;;  %v344_v9 = vld [vmem:[%s2078_s21 + $0x28] sm:$0xff]  ;;  %p1919_p0 = scmp.lt.s32.totalorder %s1913_s17, %s3436_s9 }
  0x1a   : > { %459 = vmatpush.msra.mxu0 %v330_v3  ;;  %v345_v10 = vld [vmem:[%s2078_s21 + $0x30] sm:$0xff]  ;;  %v346_v11 = vld [vmem:[%s2078_s21 + $0x38] sm:$0xff]  ;;  %v347_v12 = vld [vmem:[%s2078_s21 + $0x40] sm:$0xff] }
  0x1b   : > { %1701 = vmatmul.msk.f32.vlgmr.msra.gmra.mxu0 %vm364_vm1, %v339_v4  ;;  %v348_v13 = vld [vmem:[%s2078_s21 + $0x48] sm:$0xff]  ;;  %v349_v14 = vld [vmem:[%s2078_s21 + $0x50] sm:$0xff]  ;;  %v350_v15 = vld [vmem:[%s2078_s21 + $0x58] sm:$0xff] }
  0x1c   : > { %v351_v16 = vld [vmem:[%s2078_s21 + $0x60] sm:$0xff]  ;;  %v352_v17 = vld [vmem:[%s2078_s21 + $0x68] sm:$0xff]  ;;  %v353_v18 = vld [vmem:[%s2078_s21 + $0x70] sm:$0xff] }
  0x1d   : > { %v354_v19 = vld [vmem:[%s2078_s21 + $0x78] sm:$0xff]  ;;  %v355_v21 = vld [vmem:[%s2078_s21 + $0x80] sm:$0xff]  ;;  %v356_v23 = vld [vmem:[%s2078_s21 + $0x88] sm:$0xff] }
  0x1e   : > { %v357_v25 = vld [vmem:[%s2078_s21 + $0x90] sm:$0xff]  ;;  %v358_v27 = vld [vmem:[%s2078_s21 + $0x98] sm:$0xff]  ;;  %v359_v29 = vld [vmem:[%s2078_s21 + $0xa0] sm:$0xff] }
  0x1f   : > { %v360_v31 = vld [vmem:[%s2078_s21 + $0xa8] sm:$0xff]  ;;  %v361_v33 = vld [vmem:[%s2078_s21 + $0xb0] sm:$0xff]  ;;  %v362_v35 = vld [vmem:[%s2078_s21 + $0xb8] sm:$0xff] }
  0x20   : > { %v363_v41 = vld [vmem:[%s2078_s21 + $0xc0] sm:$0xf]  ;;  %v1757_v2 = vld [vmem:[%s3430_s3 + $0x178] sm:$0xff]  ;;  %v1740_v4 = vld [vmem:[%s3430_s3 + $0xf0] sm:$0xff]  ;;  %s1914_s21 = scalar_lea.hbm %s1913_s17, 1 }
  0x21   : > { %834 = vmatpush.msra.mxu3 %v1757_v2  ;;  %v708_v3 = vld [vmem:[%s3430_s3 + $0x78] sm:$0xff]  ;;  %751 = vmatpush.msra.mxu1 %v1740_v4  ;;  %v1728_v2 = vld [vmem:[%s3430_s3 + $0x90] sm:$0xff]  ;;  %p1915_p11 = scmp.ne.s32.totalorder %s1913_s17, %s1914_s21  ;;  %p1920_p1 = scmp.lt.s32.totalorder %s1918_s23, %s1914_s21 }
  0x22   : > { %778 = vmatpush.msra.mxu2 %v708_v3  ;;  %v1744_v3 = vld [vmem:[%s3430_s3 + $0x110] sm:$0xff] }
  0x23   : > { %1702 = vmatmul.msk.f32.gmra.mxu0 %vm364_vm1, %v340_v5  ;;  %v1756_v5 = vld [vmem:[%s3430_s3 + $0x170] sm:$0xff]  ;;  %p1916_p12 = pnand %p1915_p11, %p2050_p5  ;;  %p1921_p2 = por %p1920_p1, %p1919_p0 }
  0x24   : > { %835 = vmatpush.msra.mxu3 %v1756_v5  ;;  %v695_v4 = vld [vmem:[%s3430_s3 + $0x10] sm:$0xff]  ;;  %v1727_v5 = vld [vmem:[%s3430_s3 + $0x88] sm:$0xff] }
  0x25   : > { %p1917_p13 = pneg %p1916_p12 }
  0x27   : > { %p1922_p3 = pnand %p1921_p2, %p1917_p13 }
  0x2b   : > { %1703 = vmatmul.msk.f32.gmra.mxu0 %vm364_vm1, %v341_v6  ;;  %v707_v6 = vld [vmem:[%s3430_s3 + $0x70] sm:$0xff] }
  0x2c   : > { %779 = vmatpush.msra.mxu2 %v707_v6  ;;  %v1743_v6 = vld [vmem:[%s3430_s3 + $0x108] sm:$0xff] }
  0x33   : > { %1704 = vmatmul.msk.f32.gmra.mxu0 %vm364_vm1, %v342_v7  ;;  %v1739_v7 = vld [vmem:[%s3430_s3 + $0xe8] sm:$0xff] }
  0x34   : > { %752 = vmatpush.msra.mxu1 %v1739_v7 }
  0x3b   : > { %1705 = vmatmul.msk.f32.gmra.mxu0 %vm364_vm1, %v343_v8  ;;  %v1755_v8 = vld [vmem:[%s3430_s3 + $0x168] sm:$0xff] }
  0x3c   : > { %836 = vmatpush.msra.mxu3 %v1755_v8  ;;  %v694_v8 = vld [vmem:[%s3430_s3 + $0x8] sm:$0xff] }
  0x43   : > { %1706 = vmatmul.msk.f32.gmra.mxu0 %vm364_vm1, %v344_v9 }
  0x4b   : > { %1707 = vmatmul.msk.f32.gmra.mxu0 %vm364_vm1, %v345_v10  ;;  %v706_v10 = vld [vmem:[%s3430_s3 + $0x68] sm:$0xff] }
  0x4c   : > { %780 = vmatpush.msra.mxu2 %v706_v10  ;;  %v1726_v10 = vld [vmem:[%s3430_s3 + $0x80] sm:$0xff] }
  0x53   : > { %1708 = vmatmul.msk.f32.gmra.mxu0 %vm364_vm1, %v346_v11  ;;  %v1738_v11 = vld [vmem:[%s3430_s3 + $0xe0] sm:$0xff] }
  0x54   : > { %753 = vmatpush.msra.mxu1 %v1738_v11  ;;  %v1742_v11 = vld [vmem:[%s3430_s3 + $0x100] sm:$0xff] }
  0x5b   : > { %1709 = vmatmul.msk.f32.gmra.mxu0 %vm364_vm1, %v347_v12  ;;  %v1754_v12 = vld [vmem:[%s3430_s3 + $0x160] sm:$0xff] }
  0x5c   : > { %837 = vmatpush.msra.mxu3 %v1754_v12  ;;  %v693_v12 = vld [vmem:[%s3430_s3] sm:$0xff] }
  0x63   : > { %1710 = vmatmul.msk.f32.gmra.mxu0 %vm364_vm1, %v348_v13  ;;  %v705_v13 = vld [vmem:[%s3430_s3 + $0x60] sm:$0xff] }
  0x64   : > { %781 = vmatpush.msra.mxu2 %v705_v13 }
  0x6b   : > { %1711 = vmatmul.msk.f32.gmra.mxu0 %vm364_vm1, %v349_v14  ;;  %v1737_v14 = vld [vmem:[%s3430_s3 + $0xd8] sm:$0xff] }
  0x6c   : > { %754 = vmatpush.msra.mxu1 %v1737_v14 }
  0x73   : > { %1712 = vmatmul.msk.f32.gmra.mxu0 %vm364_vm1, %v350_v15  ;;  %v1753_v15 = vld [vmem:[%s3430_s3 + $0x158] sm:$0xff] }
  0x74   : > { %838 = vmatpush.msra.mxu3 %v1753_v15  ;;  %v1789_v15 = vld [vmem:[%s3430_s3 + $0x278] sm:$0xff] }
  0x7b   : > { %1713 = vmatmul.msk.f32.gmra.mxu0 %vm364_vm1, %v351_v16  ;;  %v704_v16 = vld [vmem:[%s3430_s3 + $0x58] sm:$0xff] }
  0x7c   : > { %782 = vmatpush.msra.mxu2 %v704_v16 }
  0x83   : > { %1714 = vmatmul.msk.f32.gmra.mxu0 %vm364_vm1, %v352_v17  ;;  %v1736_v17 = vld [vmem:[%s3430_s3 + $0xd0] sm:$0xff] }
  0x84   : > { %755 = vmatpush.msra.mxu1 %v1736_v17  ;;  %v1788_v17 = vld [vmem:[%s3430_s3 + $0x270] sm:$0xff] }
  0x8b   : > { %1715 = vmatmul.msk.f32.gmra.mxu0 %vm364_vm1, %v353_v18  ;;  %v1752_v18 = vld [vmem:[%s3430_s3 + $0x150] sm:$0xff] }
  0x8c   : > { %839 = vmatpush.msra.mxu3 %v1752_v18 }
  0x93   : > { %1716 = vmatmul.msk.f32.gmra.mxu0 %vm364_vm1, %v354_v19  ;;  %v703_v19 = vld [vmem:[%s3430_s3 + $0x50] sm:$0xff] }
  0x94   : > { %783 = vmatpush.msra.mxu2 %v703_v19 }
  0x98   : > { %v2112_v20 = vpop.f32.mrf.mxu0 }
  0x9b   : > { %1717 = vmatmul.msk.f32.gmra.mxu0 %vm364_vm1, %v355_v21  ;;  %v1735_v21 = vld [vmem:[%s3430_s3 + $0xc8] sm:$0xff] }
  0x9c   : > { %756 = vmatpush.msra.mxu1 %v1735_v21  ;;  %v1787_v21 = vld [vmem:[%s3430_s3 + $0x268] sm:$0xff] }
  0xa0   : > { %v2116_v22 = vpop.f32.mrf.mxu0 }
  0xa3   : > { %1718 = vmatmul.msk.f32.gmra.mxu0 %vm364_vm1, %v356_v23  ;;  %v1751_v23 = vld [vmem:[%s3430_s3 + $0x148] sm:$0xff] }
  0xa4   : > { %840 = vmatpush.msra.mxu3 %v1751_v23 }
  0xa8   : > { %v2120_v24 = vpop.f32.mrf.mxu0 }
  0xab   : > { %1719 = vmatmul.msk.f32.gmra.mxu0 %vm364_vm1, %v357_v25 }
  0xb0   : > { %v2124_v26 = vpop.f32.mrf.mxu0 }
  0xb3   : > { %1720 = vmatmul.msk.f32.gmra.mxu0 %vm364_vm1, %v358_v27  ;;  %v702_v27 = vld [vmem:[%s3430_s3 + $0x48] sm:$0xff] }
  0xb4   : > { %784 = vmatpush.msra.mxu2 %v702_v27 }
  0xb8   : > { %v2128_v28 = vpop.f32.mrf.mxu0 }
  0xbb   : > { %1721 = vmatmul.msk.f32.gmra.mxu0 %vm364_vm1, %v359_v29  ;;  %v1734_v29 = vld [vmem:[%s3430_s3 + $0xc0] sm:$0xff] }
  0xbc   : > { %757 = vmatpush.msra.mxu1 %v1734_v29  ;;  %v1786_v29 = vld [vmem:[%s3430_s3 + $0x260] sm:$0xff] }
  0xc0   : > { %v2132_v30 = vpop.f32.mrf.mxu0 }
  0xc3   : > { %1722 = vmatmul.msk.f32.gmra.mxu0 %vm364_vm1, %v360_v31  ;;  %v1750_v31 = vld [vmem:[%s3430_s3 + $0x140] sm:$0xff] }
  0xc4   : > { %841 = vmatpush.msra.mxu3 %v1750_v31 }
  0xc8   : > { %v479_v32 = vpop.f32.mrf.mxu0 }
  0xc9   : > { %v544_v36 = vrot.slane %v479_v32, 1 }
  0xcb   : > { %1723 = vmatmul.msk.f32.gmra.mxu0 %vm364_vm1, %v361_v33  ;;  %v1733_v33 = vld [vmem:[%s3430_s3 + $0xb8] sm:$0xff] }
  0xcc   : > { %758 = vmatpush.msra.mxu1 %v1733_v33 }
  0xd0   : > { %v482_v34 = vpop.f32.mrf.mxu0 }
  0xd1   : > { %v545_v37 = vrot.slane %v482_v34, 1  ;;  %v1749_v34 = vld [vmem:[%s3430_s3 + $0x138] sm:$0xff] }
  0xd2   : > { %842 = vmatpush.msra.mxu3 %v1749_v34 }
  0xd3   : > { %v2140_v38 = vsel %vm543_vm2, %v544_v36, %v545_v37  ;;  %1724 = vmatmul.msk.f32.gmra.mxu0 %vm364_vm1, %v362_v35  ;;  %v700_v35 = vld [vmem:[%s3430_s3 + $0x38] sm:$0xff]  ;;  %v1732_v36 = vld [vmem:[%s3430_s3 + $0xb0] sm:$0xff] }
  0xd4   : > { %v564_v39 = vmax.f32 %v2112_v20, %v2140_v38  ;;  %759 = vmatpush.msra.mxu1 %v1732_v36  ;;  %v2360_v36 = vld [vmem:[%s3429_s2] ss:$0 sm:$0xff]  ;;  %v1803_v20 = vld [vmem:[%s3430_s3 + $0x2e8] sm:$0xff] }
  0xd5   : > { %v1771_v38 = vld [vmem:[%s3430_s3 + $0x1e8] sm:$0xff] }
  0xd8   : > { %v485_v40 = vpop.f32.mrf.mxu0 }
  0xd9   : > { %v547_v42 = vrot.slane %v485_v40, 1  ;;  %v699_v40 = vld [vmem:[%s3430_s3 + $0x30] sm:$0xff] }
  0xdb   : > { %v2147_v43 = vsel %vm543_vm2, %v545_v37, %v547_v42  ;;  %1725 = vmatmul.msk.f32.gmra.mxu0 %vm364_vm1, %v363_v41  ;;  %v1748_v37 = vld [vmem:[%s3430_s3 + $0x130] sm:$0xff]  ;;  %v1731_v41 = vld [vmem:[%s3430_s3 + $0xa8] sm:$0xff] }
  0xdc   : > { %v565_v44 = vmax.f32 %v2116_v22, %v2147_v43  ;;  %843 = vmatpush.msra.mxu3 %v1748_v37  ;;  %760 = vmatpush.msra.mxu1 %v1731_v41  ;;  %v1785_v37 = vld [vmem:[%s3430_s3 + $0x258] sm:$0xff]  ;;  %v1779_v22 = vld [vmem:[%s3430_s3 + $0x228] sm:$0xff] }
  0xe0   : > { %v488_v45 = vpop.f32.mrf.mxu0 }
  0xe1   : > { %v549_v46 = vrot.slane %v488_v45, 1 }
  0xe3   : > { %v2153_v47 = vsel %vm543_vm2, %v547_v42, %v549_v46  ;;  %v1747_v42 = vld [vmem:[%s3430_s3 + $0x128] sm:$0xff] }
  0xe4   : > { %v566_v48 = vmax.f32 %v2120_v24, %v2153_v47  ;;  %844 = vmatpush.msra.mxu3 %v1747_v42  ;;  %v1804_v42 = vld [vmem:[%s3430_s3 + $0x2f0] sm:$0xff] }
  0xe5   : > { %v1776_v47 = vld [vmem:[%s3430_s3 + $0x210] sm:$0xff] }
  0xe8   : > { %v491_v49 = vpop.f32.mrf.mxu0 }
  0xe9   : > { %v551_v50 = vrot.slane %v491_v49, 1  ;;  %v1730_v49 = vld [vmem:[%s3430_s3 + $0xa0] sm:$0xff] }
  0xea   : > { %761 = vmatpush.msra.mxu1 %v1730_v49  ;;  %v1784_v49 = vld [vmem:[%s3430_s3 + $0x250] sm:$0xff] }
  0xeb   : > { %v2158_v51 = vsel %vm543_vm2, %v549_v46, %v551_v50  ;;  %v698_v46 = vld [vmem:[%s3430_s3 + $0x28] sm:$0xff] }
  0xec   : > { %v567_v52 = vmax.f32 %v2124_v26, %v2158_v51  ;;  %v1791_v26 = vld [vmem:[%s3430_s3 + $0x288] sm:$0xff]  ;;  %v1836_v51 = vld [vmem:[%s3430_s3 + $0x3f0] sm:$0xff] }
  0xf0   : > { %v494_v53 = vpop.f32.mrf.mxu0 }
  0xf1   : > { %v553_v54 = vrot.slane %v494_v53, 1  ;;  %v697_v53 = vld [vmem:[%s3430_s3 + $0x20] sm:$0xff] }
  0xf3   : > { %v2163_v55 = vsel %vm543_vm2, %v551_v50, %v553_v54  ;;  %v1746_v50 = vld [vmem:[%s3430_s3 + $0x120] sm:$0xff] }
  0xf4   : > { %v568_v56 = vmax.f32 %v2128_v28, %v2163_v55  ;;  %845 = vmatpush.msra.mxu3 %v1746_v50 }
  0xf8   : > { %v2167_v57 = vpop.f32.mrf.mxu0 }
  0xf9   : > { %v555_v58 = vrot.slane %v2167_v57, 1 }
  0xfb   : > { %v2171_v59 = vsel %vm543_vm2, %v553_v54, %v555_v58  ;;  %v2173_v60 = vmax.f32 %v479_v32, %v555_v58  ;;  %v701_v32 = vld [vmem:[%s3430_s3 + $0x40] sm:$0xff]  ;;  %v1729_v54 = vld [vmem:[%s3430_s3 + $0x98] sm:$0xff] }
  0xfc   : > { %v569_v61 = vmax.f32 %v2132_v30, %v2171_v59  ;;  %785 = vmatpush.msra.mxu2 %v701_v32  ;;  %v1745_v58 = vld [vmem:[%s3430_s3 + $0x118] sm:$0xff]  ;;  %762 = vmatpush.msra.mxu1 %v1729_v54  ;;  %v1783_v54 = vld [vmem:[%s3430_s3 + $0x248] sm:$0xff] }
  0xfd   : > { %846 = vmatpush.msra.mxu3 %v1745_v58  ;;  %v1805_v32 = vld [vmem:[%s3430_s3 + $0x2f8] sm:$0xff]  ;;  %v1802_v58 = vld [vmem:[%s3430_s3 + $0x2e0] sm:$0xff] }
  0xfe   : > { %786 = vmatpush.msra.mxu2 %v700_v35  ;;  %763 = vmatpush.msra.mxu1 %v1728_v2  ;;  %v1833_v59 = vld [vmem:[%s3430_s3 + $0x3d8] sm:$0xff] }
  0xff   : > { %847 = vmatpush.msra.mxu3 %v1744_v3  ;;  %v1801_v3 = vld [vmem:[%s3430_s3 + $0x2d8] sm:$0xff] }
 0x100   : > { %v2177_v62 = vpop.f32.mrf.mxu0  ;;  %787 = vmatpush.msra.mxu2 %v699_v40  ;;  %764 = vmatpush.msra.mxu1 %v1727_v5 }
 0x101   : > { %848 = vmatpush.msra.mxu3 %v1743_v6 }
 0x102   : > { %788 = vmatpush.msra.mxu2 %v698_v46  ;;  %765 = vmatpush.msra.mxu1 %v1726_v10  ;;  %v1772_v46 = vld [vmem:[%s3430_s3 + $0x1f0] sm:$0xff] }
 0x103   : > { %849 = vmatpush.msra.mxu3 %v1742_v11  ;;  %v1800_v10 = vld [vmem:[%s3430_s3 + $0x2d0] sm:$0xff] }
 0x104   : > { %789 = vmatpush.msra.mxu2 %v697_v53  ;;  %v1768_v11 = vld [vmem:[%s3430_s3 + $0x1d0] sm:$0xff] }
 0x105   : > { %1033 = vmatpush.msrb.mxu3 %v1805_v32 }
 0x106   : > { %790 = vmatpush.msra.mxu2 %v696_v1  ;;  %v1770_v1 = vld [vmem:[%s3430_s3 + $0x1e0] sm:$0xff] }
 0x107   : > { %1034 = vmatpush.msrb.mxu3 %v1804_v42  ;;  %v1796_v42 = vld [vmem:[%s3430_s3 + $0x2b0] sm:$0xff] }
 0x108   : > { %v2179_v63 = vpop.f32.mrf.mxu0  ;;  %791 = vmatpush.msra.mxu2 %v695_v4  ;;  %v1769_v4 = vld [vmem:[%s3430_s3 + $0x1d8] sm:$0xff] }
 0x109   : > { %1035 = vmatpush.msrb.mxu3 %v1803_v20  ;;  %v1795_v20 = vld [vmem:[%s3430_s3 + $0x2a8] sm:$0xff] }
 0x10a   : > { %792 = vmatpush.msra.mxu2 %v694_v8  ;;  %v1781_v8 = vld [vmem:[%s3430_s3 + $0x238] sm:$0xff] }
 0x10b   : > { %1036 = vmatpush.msrb.mxu3 %v1802_v58 }
 0x10c   : > { %793 = vmatpush.msra.mxu2 %v693_v12 }
 0x10d   : > { %1037 = vmatpush.msrb.mxu3 %v1801_v3 }
 0x10e   : > { %969 = vmatpush.msrb.mxu2 %v1789_v15  ;;  %v1799_v15 = vld [vmem:[%s3430_s3 + $0x2c8] sm:$0xff] }
 0x10f   : > { %1038 = vmatpush.msrb.mxu3 %v1800_v10  ;;  %v1774_v10 = vld [vmem:[%s3430_s3 + $0x200] sm:$0xff] }
 0x110   : > { %v2181_v0 = vpop.f32.mrf.mxu0  ;;  %970 = vmatpush.msrb.mxu2 %v1788_v17  ;;  %v1798_v17 = vld [vmem:[%s3430_s3 + $0x2c0] sm:$0xff] }
 0x111   : > { %1039 = vmatpush.msrb.mxu3 %v1799_v15 }
 0x112   : > { %971 = vmatpush.msrb.mxu2 %v1787_v21 }
 0x113   : > { %1040 = vmatpush.msrb.mxu3 %v1798_v17  ;;  %v1792_v17 = vld [vmem:[%s3430_s3 + $0x290] sm:$0xff] }
 0x114   : > { %972 = vmatpush.msrb.mxu2 %v1786_v29  ;;  %v1797_v29 = vld [vmem:[%s3430_s3 + $0x2b8] sm:$0xff] }
 0x115   : > { %1041 = vmatpush.msrb.mxu3 %v1797_v29 }
 0x116   : > { %973 = vmatpush.msrb.mxu2 %v1785_v37 }
 0x117   : > { %1042 = vmatpush.msrb.mxu3 %v1796_v42 }
 0x118   : > { %v2207_v9 = vpop.f32.mrf.mxu0  ;;  %974 = vmatpush.msrb.mxu2 %v1784_v49 }
 0x119   : > { %1043 = vmatpush.msrb.mxu3 %v1795_v20 }
 0x11a   : > { %975 = vmatpush.msrb.mxu2 %v1783_v54 }
 0x120   : > { %v2245_v25 = vpop.f32.mrf.mxu0 }
 0x128   : > { %v2283_v45 = vpop.f32.mrf.mxu0 }
 0x129   : > { %v578_v14 = vrot.slane %v2283_v45, 1 }
 0x130   : > { %v518_v7 = vpop.f32.mrf.mxu0 }
 0x131   : > { %v579_v13 = vrot.slane %v518_v7, 1 }
 0x133   : > { %v580_v16 = vsel %vm543_vm2, %v578_v14, %v579_v13  ;;  %v1780_v14 = vld [vmem:[%s3430_s3 + $0x230] sm:$0xff] }
 0x134   : > { %v598_v23 = vmax.f32 %v2167_v57, %v580_v16  ;;  %v1773_v57 = vld [vmem:[%s3430_s3 + $0x1f8] sm:$0xff]  ;;  %v1767_v16 = vld [vmem:[%s3430_s3 + $0x1c8] sm:$0xff] }
 0x135   : > { %906 = vmatpush.msrb.mxu1 %v1773_v57 }
 0x136   : > { %v613_v33 = vrot.slane %v598_v23, 2  ;;  %v1778_v23 = vld [vmem:[%s3430_s3 + $0x220] sm:$0xff] }
 0x137   : > { %907 = vmatpush.msrb.mxu1 %v1772_v46  ;;  %v1764_v46 = vld [vmem:[%s3430_s3 + $0x1b0] sm:$0xff] }
 0x138   : > { %v521_v18 = vpop.f32.mrf.mxu0 }
 0x139   : > { %v581_v19 = vrot.slane %v521_v18, 1  ;;  %908 = vmatpush.msrb.mxu1 %v1771_v38  ;;  %v1766_v18 = vld [vmem:[%s3430_s3 + $0x1c0] sm:$0xff] }
 0x13b   : > { %v582_v27 = vsel %vm543_vm2, %v579_v13, %v581_v19  ;;  %909 = vmatpush.msrb.mxu1 %v1770_v1 }
 0x13c   : > { %v599_v31 = vmax.f32 %v2177_v62, %v582_v27 }
 0x13d   : > { %910 = vmatpush.msrb.mxu1 %v1769_v4  ;;  %v1775_v4 = vld [vmem:[%s3430_s3 + $0x208] sm:$0xff] }
 0x13e   : > { %v614_v34 = vrot.slane %v599_v31, 2 }
 0x13f   : > { %911 = vmatpush.msrb.mxu1 %v1768_v11  ;;  %v1761_v11 = vld [vmem:[%s3430_s3 + $0x198] sm:$0xff] }
 0x140   : > { %v615_v35 = vsel %vm612_vm3, %v613_v33, %v614_v34  ;;  %v524_v62 = vpop.f32.mrf.mxu0 }
 0x141   : > { %v633_v40 = vmax.f32 %v564_v39, %v615_v35  ;;  %v583_v41 = vrot.slane %v524_v62, 1  ;;  %912 = vmatpush.msrb.mxu1 %v1767_v16 }
 0x143   : > { %v584_v50 = vsel %vm543_vm2, %v581_v19, %v583_v41  ;;  %v640_v53 = vadd.f32 %v2360_v36, %v633_v40  ;;  %913 = vmatpush.msrb.mxu1 %v1766_v18  ;;  %v1837_v18 = vld [vmem:[%s3430_s3 + $0x3f8] sm:$0xff] }
 0x144   : > { %v600_v39 = vmax.f32 %v2179_v63, %v584_v50  ;;  %v1782_v63 = vld [vmem:[%s3430_s3 + $0x240] sm:$0xff] }
 0x145   : > { %976 = vmatpush.msrb.mxu2 %v1782_v63  ;;  %v654_v7 = vmul.f32 0.02, %v640_v53  ;;  %vm647_vm4 = vcmp.gt.f32.partialorder %v640_v53, 0.0  ;;  %v1794_v63 = vld [vmem:[%s3430_s3 + $0x2a0] sm:$0xff] }
 0x146   : > { %v616_v2 = vrot.slane %v600_v39, 2  ;;  %1044 = vmatpush.msrb.mxu3 %v1794_v63 }
 0x147   : > { %977 = vmatpush.msrb.mxu2 %v1781_v8  ;;  %v661_v21 = vsel %vm647_vm4, %v640_v53, %v654_v7 }
 0x148   : > { %v617_v5 = vsel %vm612_vm3, %v614_v34, %v616_v2  ;;  %v2405_v6 = vpop.f32.mrf.mxu0  ;;  %v670_v33 = vrot.slane %v661_v21, 2  ;;  %v1765_v34 = vld [vmem:[%s3430_s3 + $0x1b8] sm:$0xff]  ;;  %v865_v54 = vrot.slane %v661_v21, 7 }
 0x149   : > { %v634_v12 = vmax.f32 %v565_v44, %v617_v5  ;;  %v585_v13 = vrot.slane %v2405_v6, 1  ;;  %978 = vmatpush.msrb.mxu2 %v1780_v14  ;;  %914 = vmatpush.msrb.mxu1 %v1765_v34  ;;  %v1762_v5 = vld [vmem:[%s3430_s3 + $0x1a0] sm:$0xff] }
 0x14b   : > { %v641_v43 = vadd.f32 %v2360_v36, %v634_v12  ;;  %v586_v44 = vsel %vm543_vm2, %v583_v41, %v585_v13  ;;  %979 = vmatpush.msrb.mxu2 %v1779_v22  ;;  %v1777_v41 = vld [vmem:[%s3430_s3 + $0x218] sm:$0xff]  ;;  %915 = vmatpush.msrb.mxu1 %v1764_v46 }
 0x14c   : > { %v601_v19 = vmax.f32 %v2181_v0, %v586_v44  ;;  %v709_v0 = vrot.slane %v661_v21, 1 }
 0x14d   : > { %vm648_vm5 = vcmp.gt.f32.partialorder %v641_v43, 0.0  ;;  %v655_v27 = vmul.f32 0.02, %v641_v43  ;;  %980 = vmatpush.msrb.mxu2 %v1778_v23 }
 0x14e   : > { %v618_v31 = vrot.slane %v601_v19, 2  ;;  %v1760_v19 = vld [vmem:[%s3430_s3 + $0x190] sm:$0xff] }
 0x14f   : > { %v2447_v32 = vsel %vm648_vm5, %v641_v43, %v655_v27  ;;  %981 = vmatpush.msrb.mxu2 %v1777_v41 }
 0x150   : > { %v619_v57 = vsel %vm612_vm3, %v616_v2, %v618_v31  ;;  %v2453_v35 = vpop.f32.mrf.mxu0  ;;  %v711_v62 = vrot.slane %v2447_v32, 3  ;;  %v2457_v37 = vrot.slane %v2447_v32, 4  ;;  %v2460_v40 = vrot.slane %v2447_v32, 2 }
 0x151   : > { %v635_v49 = vmax.f32 %v566_v48, %v619_v57  ;;  %v587_v50 = vrot.slane %v2453_v35, 1  ;;  %v866_v38 = vrot.slane %v2447_v32, 7  ;;  %v1763_v48 = vld [vmem:[%s3430_s3 + $0x1a8] sm:$0xff]  ;;  %982 = vmatpush.msrb.mxu2 %v1776_v47  ;;  %v869_v14 = vrot.slane %v2447_v32, 1 }
 0x152   : > { %v729_v39 = vsel %vm688_vm6, %v709_v0, %v711_v62  ;;  %v813_v53 = vsel %vm688_vm6, %v670_v33, %v2457_v37  ;;  %v672_v24 = vsel %vm612_vm3, %v670_v33, %v2460_v40  ;;  %916 = vmatpush.msrb.mxu1 %v1763_v48  ;;  %v1835_v48 = vld [vmem:[%s3430_s3 + $0x3e8] sm:$0xff] }
 0x153   : > { %v642_v58 = vadd.f32 %v2360_v36, %v635_v49  ;;  %v588_v1 = vsel %vm543_vm2, %v585_v13, %v587_v50  ;;  %766 = vmatmul.f32.vlgmr.msra.gmra.mxu1 %v729_v39  ;;  %850 = vmatmul.f32.vlgmr.msra.gmra.mxu3 %v813_v53  ;;  %v689_v2 = vsel %vm688_vm6, %v661_v21, %v672_v24  ;;  %v713_v13 = vrot.slane %v2447_v32, 5 }
 0x154   : > { %v602_v3 = vmax.f32 %v2207_v9, %v588_v1  ;;  %794 = vmatmul.f32.vlgmr.msra.gmra.mxu2 %v689_v2  ;;  %v2510_v6 = vsel %vm717_vm7, %v865_v54, %v866_v38  ;;  %v1793_v9 = vld [vmem:[%s3430_s3 + $0x298] sm:$0xff]  ;;  %917 = vmatpush.msrb.mxu1 %v1762_v5  ;;  %v1758_v54 = vld [vmem:[%s3430_s3 + $0x180] sm:$0xff] }
 0x155   : > { %vm649_vm8 = vcmp.gt.f32.partialorder %v642_v58, 0.0  ;;  %v656_v7 = vmul.f32 0.02, %v642_v58  ;;  %983 = vmatpush.msrb.mxu2 %v1775_v4  ;;  %1045 = vmatpush.msrb.mxu3 %v1793_v9  ;;  %v1852_v9 = vld [vmem:[%s3430_s3 + $0x470] sm:$0xff] }
 0x156   : > { %v2515_v8 = vrot.slane %v602_v3, 2  ;;  %918 = vmatpush.msrb.mxu1 %v1761_v11 }
 0x157   : > { %v2523_v12 = vsel %vm649_vm8, %v642_v58, %v656_v7  ;;  %984 = vmatpush.msrb.mxu2 %v1774_v10  ;;  %1046 = vmatpush.msrb.mxu3 %v1792_v17  ;;  %v1821_v7 = vld [vmem:[%s3430_s3 + $0x378] sm:$0xff] }
 0x158   : > { %v621_v15 = vsel %vm612_vm3, %v618_v31, %v2515_v8  ;;  %v533_v16 = vpop.f32.mrf.mxu0  ;;  %v2530_v22 = vrot.slane %v2523_v12, 6  ;;  %v714_v43 = vrot.slane %v2523_v12, 5  ;;  %v2534_v44 = vrot.slane %v2523_v12, 7  ;;  %919 = vmatpush.msrb.mxu1 %v1760_v19  ;;  %v1832_v19 = vld [vmem:[%s3430_s3 + $0x3d0] sm:$0xff] }
 0x159   : > { %v636_v21 = vmax.f32 %v567_v52, %v621_v15  ;;  %v589_v23 = vrot.slane %v533_v16, 1  ;;  %v678_v27 = vrot.slane %v2523_v12, 4  ;;  %v2550_v29 = vrot.slane %v2523_v12, 2  ;;  %1158 = vmatpush.msra.mxu2 %v1837_v18  ;;  %1047 = vmatpush.msrb.mxu3 %v1791_v26  ;;  %v1819_v18 = vld [vmem:[%s3430_s3 + $0x368] sm:$0xff] }
 0x15a   : > { %v814_v31 = vsel %vm682_vm9, %v2457_v37, %v2530_v22  ;;  %v715_v0 = vsel %vm440_vm0, %v713_v13, %v714_v43  ;;  %v2565_v52 = vrot.slane %v2523_v12, 1  ;;  %v2568_v33 = vrot.slane %v2523_v12, 3  ;;  %v1820_v13 = vld [vmem:[%s3430_s3 + $0x370] sm:$0xff] }
 0x15b   : > { %v643_v34 = vadd.f32 %v2360_v36, %v636_v21  ;;  %v590_v57 = vsel %vm543_vm2, %v587_v50, %v589_v23  ;;  %v604_v41 = vmax.f32 %v2283_v45, %v589_v23  ;;  %v815_v42 = vsel %vm543_vm2, %v814_v31, %v2523_v12  ;;  %v1759_v50 = vld [vmem:[%s3430_s3 + $0x188] sm:$0xff]  ;;  %1159 = vmatpush.msra.mxu2 %v1836_v51  ;;  %v1850_v21 = vld [vmem:[%s3430_s3 + $0x460] sm:$0xff] }
 0x15c   : > { %v603_v46 = vmax.f32 %v2245_v25, %v590_v57  ;;  %853 = vmatmul.f32.gmra.mxu3 %v815_v42  ;;  %v730_v49 = vsel %vm682_vm9, %v711_v62, %v715_v0  ;;  %v679_v35 = vsel %vm676_vm10, %v2457_v37, %v678_v27  ;;  %v938_v45 = vsel %vm612_vm3, %v2460_v40, %v2550_v29  ;;  %v1790_v25 = vld [vmem:[%s3430_s3 + $0x280] sm:$0xff]  ;;  %v1853_v37 = vld [vmem:[%s3430_s3 + $0x478] sm:$0xff] }
 0x15d   : > { %vm650_vm11 = vcmp.gt.f32.partialorder %v643_v34, 0.0  ;;  %v657_v20 = vmul.f32 0.02, %v643_v34  ;;  %v624_v62 = vrot.slane %v604_v41, 2  ;;  %v731_v39 = vsel %vm543_vm2, %v730_v49, %v2534_v44  ;;  %920 = vmatpush.msrb.mxu1 %v1759_v50  ;;  %1048 = vmatpush.msrb.mxu3 %v1790_v25  ;;  %v1818_v23 = vld [vmem:[%s3430_s3 + $0x360] sm:$0xff] }
 0x15e   : > { %v622_v53 = vrot.slane %v603_v46, 2  ;;  %769 = vmatmul.f32.gmra.mxu1 %v731_v39  ;;  %v690_v24 = vsel %vm682_vm9, %v2460_v40, %v679_v35  ;;  %v2603_v47 = vsel %vm688_vm6, %v2447_v32, %v938_v45  ;;  %v871_v58 = vsel %vm543_vm2, %v869_v14, %v2565_v52  ;;  %1160 = vmatpush.msra.mxu2 %v1835_v48  ;;  %v1849_v46 = vld [vmem:[%s3430_s3 + $0x458] sm:$0xff]  ;;  %v1830_v39 = vld [vmem:[%s3430_s3 + $0x3c0] sm:$0xff] }
 0x15f   : > { %v2615_v1 = vsel %vm650_vm11, %v643_v34, %v657_v20  ;;  %v2618_v40 = vmax.f32 %v2173_v60, %v624_v62  ;;  %v691_v2 = vsel %vm543_vm2, %v690_v24, %v2530_v22  ;;  %v1834_v60 = vld [vmem:[%s3430_s3 + $0x3e0] sm:$0xff]  ;;  %1218 = vmatpush.msra.mxu3 %v1853_v37  ;;  %921 = vmatpush.msrb.mxu1 %v1758_v54  ;;  %v1064_v15 = vrot.slane %v2447_v32, 6  ;;  %v1817_v37 = vld [vmem:[%s3430_s3 + $0x358] sm:$0xff] }
 0x160   : > { %v623_v63 = vsel %vm612_vm3, %v2515_v8, %v622_v53  ;;  %v625_v3 = vsel %vm612_vm3, %v622_v53, %v624_v62  ;;  %797 = vmatmul.f32.gmra.mxu2 %v691_v2  ;;  %v2626_v4 = vrot.slane %v2615_v1, 6  ;;  %v2629_v5 = vrot.slane %v2615_v1, 7  ;;  %v1848_v53 = vld [vmem:[%s3430_s3 + $0x450] sm:$0xff] }
 0x161   : > { %v637_v8 = vmax.f32 %v568_v56, %v623_v63  ;;  %v638_v10 = vmax.f32 %v569_v61, %v625_v3  ;;  %v2647_v11 = vrot.slane %v2615_v1, 1  ;;  %v2663_v55 = vsel %vm688_vm6, %v2510_v6, %v871_v58  ;;  %1092 = vmatpush.msra.mxu1 %v1821_v7  ;;  %v1851_v61 = vld [vmem:[%s3430_s3 + $0x468] sm:$0xff]  ;;  %1161 = vmatpush.msra.mxu2 %v1834_v60  ;;  %v1816_v3 = vld [vmem:[%s3430_s3 + $0x350] sm:$0xff] }
 0x162   : > { %v685_v28 = vsel %vm682_vm9, %v2530_v22, %v2626_v4  ;;  %v2659_v30 = vsel %vm717_vm7, %v2534_v44, %v2629_v5  ;;  %v2669_v56 = vsel %vm688_vm6, %v869_v14, %v2568_v33  ;;  %v941_v14 = vrot.slane %v2615_v1, 4  ;;  %1219 = vmatpush.msra.mxu3 %v1852_v9 }
 0x163   : > { %v644_v16 = vadd.f32 %v2360_v36, %v637_v8  ;;  %v645_v6 = vadd.f32 %v2360_v36, %v638_v10  ;;  %v692_v17 = vsel %vm676_vm10, %v685_v28, %v2615_v1  ;;  %1093 = vmatpush.msra.mxu1 %v1820_v13  ;;  %v875_v31 = vrot.slane %v2615_v1, 3  ;;  %1162 = vmatpush.msra.mxu2 %v1833_v59  ;;  %v1847_v10 = vld [vmem:[%s3430_s3 + $0x448] sm:$0xff] }
 0x164   : > { %v878_v0 = vrot.slane %v2615_v1, 5  ;;  %v1123_v26 = vsel %vm717_vm7, %v866_v38, %v2534_v44  ;;  %v1125_v51 = vsel %vm543_vm2, %v2565_v52, %v2647_v11  ;;  %1220 = vmatpush.msra.mxu3 %v1851_v61  ;;  %v942_v41 = vsel %vm676_vm10, %v678_v27, %v941_v14  ;;  %v1831_v38 = vld [vmem:[%s3430_s3 + $0x3c8] sm:$0xff] }
 0x165   : > { %vm651_vm12 = vcmp.gt.f32.partialorder %v644_v16, 0.0  ;;  %vm652_vm13 = vcmp.gt.f32.partialorder %v645_v6, 0.0  ;;  %v658_v34 = vmul.f32 0.02, %v644_v16  ;;  %v659_v57 = vmul.f32 0.02, %v645_v6  ;;  %1094 = vmatpush.msra.mxu1 %v1819_v18  ;;  %1163 = vmatpush.msra.mxu2 %v1832_v19 }
 0x166   : > { %v876_v44 = vsel %vm688_vm6, %v2568_v33, %v875_v31  ;;  %v1002_v42 = vsel %vm440_vm0, %v714_v43, %v878_v0  ;;  %v2722_v27 = vsel %vm688_vm6, %v1123_v26, %v1125_v51  ;;  %v2729_v45 = vrot.slane %v2615_v1, 2  ;;  %1221 = vmatpush.msra.mxu3 %v1850_v21  ;;  %v1827_v21 = vld [vmem:[%s3430_s3 + $0x3a8] sm:$0xff] }
 0x167   : > { %v2724_v49 = vsel %vm651_vm12, %v644_v16, %v658_v34  ;;  %v2726_v35 = vsel %vm652_vm13, %v645_v6, %v659_v57  ;;  %v949_v50 = vsel %vm682_vm9, %v2550_v29, %v942_v41  ;;  %1095 = vmatpush.msra.mxu1 %v1818_v23  ;;  %v886_v62 = vsel %vm682_vm9, %v2565_v52, %v876_v44  ;;  %v1846_v6 = vld [vmem:[%s3430_s3 + $0x440] sm:$0xff] }
 0x168   : > { %800 = vmatmul.f32.gmra.mxu2 %v692_v17  ;;  %v2734_v43 = vrot.slane %v2724_v49, 1  ;;  %v809_v25 = vrot.slane %v2724_v49, 2  ;;  %v2739_v20 = vsel %vm543_vm2, %v949_v50, %v2626_v4  ;;  %v2753_v24 = vsel %vm543_vm2, %v886_v62, %v878_v0  ;;  %1222 = vmatpush.msra.mxu3 %v1849_v46  ;;  %v1814_v23 = vld [vmem:[%s3430_s3 + $0x340] sm:$0xff] }
 0x169   : > { %1164 = vmatpush.msra.mxu2 %v1831_v38  ;;  %v1013_v48 = vsel %vm682_vm9, %v2568_v33, %v1002_v42  ;;  %v2758_v52 = vrot.slane %v2724_v49, 6  ;;  %v879_v54 = vrot.slane %v2724_v49, 5  ;;  %1096 = vmatpush.msra.mxu1 %v1817_v37  ;;  %v1829_v33 = vld [vmem:[%s3430_s3 + $0x3b8] sm:$0xff]  ;;  %v2779_v60 = vrot.slane %v2724_v49, 7 }
 0x16a   : > { %v726_v58 = vsel %vm543_vm2, %v2647_v11, %v2734_v43  ;;  %v810_v2 = vsel %vm612_vm3, %v2729_v45, %v809_v25  ;;  %v2770_v63 = vsel %vm543_vm2, %v1013_v48, %v2629_v5  ;;  %1223 = vmatpush.msra.mxu3 %v1848_v53  ;;  %v1008_v13 = vrot.slane %v2726_v35, 1  ;;  %v1824_v53 = vld [vmem:[%s3430_s3 + $0x390] sm:$0xff]  ;;  %v1843_v48 = vld [vmem:[%s3430_s3 + $0x428] sm:$0xff] }
 0x16b   : > { %v732_v7 = vsel %vm676_vm10, %v2659_v30, %v726_v58  ;;  %v816_v9 = vsel %vm676_vm10, %v2615_v1, %v810_v2  ;;  %1165 = vmatpush.msra.mxu2 %v1830_v39  ;;  %v945_v8 = vsel %vm682_vm9, %v2626_v4, %v2758_v52  ;;  %v1828_v30 = vld [vmem:[%s3430_s3 + $0x3b0] sm:$0xff]  ;;  %v1815_v4 = vld [vmem:[%s3430_s3 + $0x348] sm:$0xff]  ;;  %v880_v59 = vsel %vm440_vm0, %v878_v0, %v879_v54  ;;  %v1822_v58 = vld [vmem:[%s3430_s3 + $0x380] sm:$0xff] }
 0x16c   : > { %772 = vmatmul.f32.gmra.mxu1 %v732_v7  ;;  %856 = vmatmul.f32.gmra.mxu3 %v816_v9  ;;  %v2794_v28 = vsel %vm676_vm10, %v945_v8, %v2724_v49  ;;  %v1004_v61 = vsel %vm717_vm7, %v2629_v5, %v2779_v60  ;;  %v1128_v16 = vrot.slane %v2724_v49, 3  ;;  %v2812_v17 = vsel %vm676_vm10, %v880_v59, %v2779_v60  ;;  %v1839_v7 = vld [vmem:[%s3430_s3 + $0x408] sm:$0xff] }
 0x16d   : > { %1166 = vmatpush.msra.mxu2 %v1829_v33  ;;  %1097 = vmatpush.msra.mxu1 %v1816_v3  ;;  %v1009_v18 = vsel %vm543_vm2, %v2734_v43, %v1008_v13  ;;  %v1065_v5 = vsel %vm682_vm9, %v1064_v15, %v2530_v22  ;;  %v1067_v19 = vrot.slane %v2724_v49, 4  ;;  %v1189_v32 = vsel %vm612_vm3, %v2550_v29, %v2729_v45  ;;  %v1845_v15 = vld [vmem:[%s3430_s3 + $0x438] sm:$0xff]  ;;  %v1808_v3 = vld [vmem:[%s3430_s3 + $0x310] sm:$0xff]  ;;  %v1807_v9 = vld [vmem:[%s3430_s3 + $0x308] sm:$0xff] }
 0x16e   : > { %1224 = vmatpush.msra.mxu3 %v1847_v10  ;;  %v2830_v0 = vsel %vm676_vm10, %v1004_v61, %v1009_v18  ;;  %v2834_v26 = vsel %vm688_vm6, %v1065_v5, %v2523_v12  ;;  %v1129_v22 = vsel %vm688_vm6, %v875_v31, %v1128_v16  ;;  %v2847_v51 = vsel %vm688_vm6, %v2523_v12, %v1189_v32  ;;  %v1826_v31 = vld [vmem:[%s3430_s3 + $0x3a0] sm:$0xff]  ;;  %v1813_v12 = vld [vmem:[%s3430_s3 + $0x338] sm:$0xff] }
 0x16f   : > { %1167 = vmatpush.msra.mxu2 %v1828_v30  ;;  %1098 = vmatpush.msra.mxu1 %v1815_v4  ;;  %v1138_v34 = vsel %vm682_vm9, %v2647_v11, %v1129_v22  ;;  %v1072_v29 = vsel %vm682_vm9, %v2615_v1, %v810_v2  ;;  %v1131_v57 = vrot.slane %v2726_v35, 5  ;;  %v1192_v38 = vsel %vm676_vm10, %v941_v14, %v1067_v19  ;;  %v1825_v1 = vld [vmem:[%s3430_s3 + $0x398] sm:$0xff]  ;;  %v1844_v14 = vld [vmem:[%s3430_s3 + $0x430] sm:$0xff]  ;;  %v1366_v18 = vld [vmem:[%s3432_s5 + $0x1a0] sm:$0xff] }
 0x170   : > { %803 = vmatmul.f32.gmra.mxu2 %v2724_v49  ;;  %1225 = vmatpush.msra.mxu3 %v1846_v6  ;;  %v2862_v41 = vsel %vm543_vm2, %v1138_v34, %v879_v54  ;;  %v2865_v11 = vsel %vm543_vm2, %v1072_v29, %v1067_v19  ;;  %v1135_v44 = vrot.slane %v2726_v35, 7  ;;  %v1198_v42 = vsel %vm682_vm9, %v2729_v45, %v1192_v38  ;;  %v1823_v49 = vld [vmem:[%s3430_s3 + $0x388] sm:$0xff]  ;;  %v1841_v2 = vld [vmem:[%s3430_s3 + $0x418] sm:$0xff]  ;;  %v1374_v6 = vld [vmem:[%s3432_s5 + $0x1e0] sm:$0xff] }
 0x171   : > { %1168 = vmatpush.msra.mxu2 %v1827_v21  ;;  %1099 = vmatpush.msra.mxu1 %v1814_v23  ;;  %v1132_v46 = vsel %vm440_vm0, %v879_v54, %v1131_v57  ;;  %v2875_v50 = vrot.slane %v2726_v35, 6  ;;  %v2879_v62 = vadd.f32 %v2360_v36, %v2618_v40  ;;  %v1199_v45 = vsel %vm543_vm2, %v1198_v42, %v2758_v52  ;;  %v1812_v36 = vld [vmem:[%s3430_s3 + $0x330] sm:$0xff]  ;;  %v1809_v33 = vld [vmem:[%s3430_s3 + $0x318] sm:$0xff]  ;;  %v1362_v23 = vld [vmem:[%s3432_s5 + $0x180] sm:$0xff] }
 0x172   : > { %1226 = vmatpush.msra.mxu3 %v1845_v15  ;;  %v1140_v39 = vsel %vm676_vm10, %v1132_v46, %v1135_v44  ;;  %v1350_v22 = vld [vmem:[%s3432_s5 + $0x120] sm:$0xff]  ;;  %vm1625_vm7 = vcmask 73728  }
 0x173   : > { %1169 = vmatpush.msra.mxu2 %v1826_v31  ;;  %1100 = vmatpush.msra.mxu1 %v1813_v12  ;;  %v1074_v40 = vsel %vm676_vm10, %v1067_v19, %v2875_v50  ;;  %v1194_v37 = vsel %vm682_vm9, %v2758_v52, %v2875_v50  ;;  %v1810_v52 = vld [vmem:[%s3430_s3 + $0x320] sm:$0xff]  ;;  %vm653_vm14 = vcmp.gt.f32.partialorder %v2879_v62, 0.0 }
 0x174   : > { %775 = vmatmul.f32.gmra.mxu1 %v2734_v43  ;;  %859 = vmatmul.f32.gmra.mxu3 %v809_v25  ;;  %v1200_v54 = vsel %vm676_vm10, %v1194_v37, %v2726_v35  ;;  %v1811_v43 = vld [vmem:[%s3430_s3 + $0x328] sm:$0xff]  ;;  %v1842_v25 = vld [vmem:[%s3430_s3 + $0x420] sm:$0xff]  ;;  %v1368_v37 = vld [vmem:[%s3432_s5 + $0x1b0] sm:$0xff] }
 0x175   : > { %1170 = vmatpush.msra.mxu2 %v1825_v1  ;;  %1227 = vmatpush.msra.mxu3 %v1844_v14  ;;  %v1346_v31 = vld [vmem:[%s3432_s5 + $0x100] sm:$0xff] }
 0x176   : > { %1101 = vmatpush.msra.mxu1 %v1812_v36  ;;  %v1342_v12 = vld [vmem:[%s3432_s5 + $0xe0] sm:$0xff] }
 0x177   : > { %1171 = vmatpush.msra.mxu2 %v1824_v53  ;;  %1228 = vmatpush.msra.mxu3 %v1843_v48  ;;  %v1334_v38 = vld [vmem:[%s3432_s5 + $0xa0] sm:$0xff] }
 0x178   : > { %985 = vmatmul.f32.vlgmr.msrb.gmra.mxu2 %v2603_v47  ;;  %1102 = vmatpush.msra.mxu1 %v1811_v43  ;;  %v1840_v47 = vld [vmem:[%s3430_s3 + $0x410] sm:$0xff]  ;;  %v1330_v46 = vld [vmem:[%s3432_s5 + $0x80] sm:$0xff] }
 0x179   : > { %1172 = vmatpush.msra.mxu2 %v1823_v49  ;;  %1229 = vmatpush.msra.mxu3 %v1842_v25  ;;  %v1326_v14 = vld [vmem:[%s3432_s5 + $0x60] sm:$0xff] }
 0x17a   : > { %1103 = vmatpush.msra.mxu1 %v1810_v52  ;;  %v1322_v53 = vld [vmem:[%s3432_s5 + $0x40] sm:$0xff] }
 0x17b   : > { %1173 = vmatpush.msra.mxu2 %v1822_v58  ;;  %1230 = vmatpush.msra.mxu3 %v1841_v2  ;;  %v1318_v49 = vld [vmem:[%s3432_s5 + $0x20] sm:$0xff] }
 0x17c   : > { %922 = vmatmul.f32.vlgmr.msrb.gmra.mxu1 %v2663_v55  ;;  %1049 = vmatmul.f32.vlgmr.msrb.gmra.mxu3 %v2669_v56  ;;  %v1838_v55 = vld [vmem:[%s3430_s3 + $0x400] sm:$0xff] }
 0x17d   : > { %1104 = vmatpush.msra.mxu1 %v1809_v33  ;;  %1231 = vmatpush.msra.mxu3 %v1840_v47  ;;  %v1806_v56 = vld [vmem:[%s3430_s3 + $0x300] sm:$0xff] }
 0x17f   : > { %1105 = vmatpush.msra.mxu1 %v1808_v3  ;;  %1232 = vmatpush.msra.mxu3 %v1839_v7  ;;  %v1364_v3 = vld [vmem:[%s3432_s5 + $0x190] sm:$0xff]  ;;  %v1314_v7 = vld [vmem:[%s3432_s5] sm:$0xff] }
 0x180   : > { %988 = vmatmul.f32.gmra.mxu2 %v2739_v20  ;;  %v660_v20 = vmul.f32 0.02, %v2879_v62 }
 0x181   : > { %1106 = vmatpush.msra.mxu1 %v1807_v9  ;;  %1233 = vmatpush.msra.mxu3 %v1838_v55  ;;  %v1359_v9 = vld [vmem:[%s3432_s5 + $0x168] sm:$0xff] }
 0x183   : > { %1107 = vmatpush.msra.mxu1 %v1806_v56 }
 0x184   : > { %925 = vmatmul.f32.gmra.mxu1 %v2753_v24  ;;  %1052 = vmatmul.f32.gmra.mxu3 %v2770_v63 }
 0x185   : > { %1388 = vmatpush.msrb.mxu1 %v1374_v6  ;;  %v1347_v6 = vld [vmem:[%s3432_s5 + $0x108] sm:$0xff] }
 0x188   : > { %991 = vmatmul.f32.gmra.mxu2 %v2794_v28 }
 0x18c   : > { %928 = vmatmul.f32.gmra.mxu1 %v2812_v17  ;;  %1055 = vmatmul.f32.gmra.mxu3 %v2830_v0  ;;  %v1370_v17 = vld [vmem:[%s3432_s5 + $0x1c0] sm:$0xff] }
 0x18d   : > { %1389 = vmatpush.msrb.mxu1 %v1370_v17  ;;  %v1358_v0 = vld [vmem:[%s3432_s5 + $0x160] sm:$0xff]  ;;  %v1365_v17 = vld [vmem:[%s3432_s5 + $0x198] sm:$0xff] }
 0x18f   : > { %1390 = vmatpush.msrb.mxu1 %v1366_v18 }
 0x190   : > { %994 = vmatmul.f32.gmra.mxu2 %v2726_v35 }
 0x191   : > { %1391 = vmatpush.msrb.mxu1 %v1362_v23  ;;  %v1361_v23 = vld [vmem:[%s3432_s5 + $0x178] sm:$0xff] }
 0x193   : > { %1392 = vmatpush.msrb.mxu1 %v1358_v0  ;;  %v1344_v0 = vld [vmem:[%s3432_s5 + $0xf0] sm:$0xff] }
 0x194   : > { %931 = vmatmul.f32.gmra.mxu1 %v2779_v60  ;;  %1058 = vmatmul.f32.gmra.mxu3 %v1008_v13 }
 0x198   : > { %1174 = vmatmul.f32.vlgmr.msra.gmra.mxu2 %v2722_v27  ;;  %v667_v27 = vsel %vm653_vm14, %v2879_v62, %v660_v20  ;;  %v1376_v62 = vld [vmem:[%s3432_s5 + $0x1f0] sm:$0xff] }
 0x199   : > { %1428 = vmatpush.msrb.mxu3 %v1376_v62  ;;  %v1360_v20 = vld [vmem:[%s3432_s5 + $0x170] sm:$0xff] }
 0x19c   : > { %1108 = vmatmul.f32.vlgmr.msra.gmra.mxu1 %v2834_v26  ;;  %1234 = vmatmul.f32.vlgmr.msra.gmra.mxu3 %v2847_v51  ;;  %v1354_v26 = vld [vmem:[%s3432_s5 + $0x140] sm:$0xff] }
 0x19d   : > { %1393 = vmatpush.msrb.mxu1 %v1354_v26 }
 0x19f   : > { %1394 = vmatpush.msrb.mxu1 %v1350_v22  ;;  %v1339_v22 = vld [vmem:[%s3432_s5 + $0xc8] sm:$0xff] }
 0x1a0   : > { %1177 = vmatmul.f32.gmra.mxu2 %v2862_v41  ;;  %v1338_v41 = vld [vmem:[%s3432_s5 + $0xc0] sm:$0xff] }
 0x1a1   : > { %1395 = vmatpush.msrb.mxu1 %v1346_v31 }
 0x1a3   : > { %1396 = vmatpush.msrb.mxu1 %v1342_v12  ;;  %v1335_v12 = vld [vmem:[%s3432_s5 + $0xa8] sm:$0xff] }
 0x1a4   : > { %1111 = vmatmul.f32.gmra.mxu1 %v2865_v11  ;;  %1237 = vmatmul.f32.gmra.mxu3 %v1199_v45  ;;  %v1371_v45 = vld [vmem:[%s3432_s5 + $0x1c8] sm:$0xff] }
 0x1a5   : > { %1397 = vmatpush.msrb.mxu1 %v1338_v41  ;;  %v1353_v41 = vld [vmem:[%s3432_s5 + $0x138] sm:$0xff] }
 0x1a7   : > { %1398 = vmatpush.msrb.mxu1 %v1334_v38 }
 0x1a8   : > { %1180 = vmatmul.f32.gmra.mxu2 %v1140_v39  ;;  %v1372_v39 = vld [vmem:[%s3432_s5 + $0x1d0] sm:$0xff] }
 0x1a9   : > { %1399 = vmatpush.msrb.mxu1 %v1330_v46  ;;  %1429 = vmatpush.msrb.mxu3 %v1372_v39  ;;  %v1327_v39 = vld [vmem:[%s3432_s5 + $0x68] sm:$0xff] }
 0x1ab   : > { %1400 = vmatpush.msrb.mxu1 %v1326_v14  ;;  %1430 = vmatpush.msrb.mxu3 %v1368_v37  ;;  %v1332_v14 = vld [vmem:[%s3432_s5 + $0x90] sm:$0xff] }
 0x1ac   : > { %1114 = vmatmul.f32.gmra.mxu1 %v1074_v40  ;;  %1240 = vmatmul.f32.gmra.mxu3 %v1200_v54  ;;  %v1367_v40 = vld [vmem:[%s3432_s5 + $0x1a8] sm:$0xff]  ;;  %v1328_v37 = vld [vmem:[%s3432_s5 + $0x70] sm:$0xff] }
 0x1ad   : > { %v1363_v54 = vld [vmem:[%s3432_s5 + $0x188] sm:$0xff]  ;;  %1401 = vmatpush.msrb.mxu1 %v1322_v53  ;;  %1431 = vmatpush.msrb.mxu3 %v1364_v3 }
 0x1af   : > { %1402 = vmatpush.msrb.mxu1 %v1318_v49  ;;  %1432 = vmatpush.msrb.mxu3 %v1360_v20  ;;  %v3155_v49 = vld [vmem:[%s3431_s4] ss:$0 sm:$0xff]  ;;  %v1333_v20 = vld [vmem:[%s3432_s5 + $0x98] sm:$0xff] }
 0x1b0   : > { %1183 = vmatmul.f32.gmra.mxu2 %v1135_v44 }
 0x1b1   : > { %1403 = vmatpush.msrb.mxu1 %v1314_v7 }
 0x1b4   : > { %1117 = vmatmul.f32.gmra.mxu1 %v2875_v50  ;;  %1243 = vmatmul.f32.gmra.mxu3 %v667_v27  ;;  %v1375_v50 = vld [vmem:[%s3432_s5 + $0x1e8] sm:$0xff]  ;;  %v1377_v27 = vld [vmem:[%s3432_s5 + $0x1f8] sm:$0xff] }
 0x1b5   : > { %1408 = vmatpush.msrb.mxu2 %v1375_v50  ;;  %1448 = vmatpush.msra.mxu1 %v1377_v27  ;;  %v1349_v50 = vld [vmem:[%s3432_s5 + $0x118] sm:$0xff] }
 0x1b7   : > { %1409 = vmatpush.msrb.mxu2 %v1371_v45 }
 0x1b9   : > { %1410 = vmatpush.msrb.mxu2 %v1367_v40 }
 0x1bb   : > { %1411 = vmatpush.msrb.mxu2 %v1363_v54  ;;  %v1341_v54 = vld [vmem:[%s3432_s5 + $0xd8] sm:$0xff] }
 0x1bd   : > { %1412 = vmatpush.msrb.mxu2 %v1359_v9  ;;  %v1320_v9 = vld [vmem:[%s3432_s5 + $0x30] sm:$0xff] }
 0x1d0   : > { %v767_v24 = vpop.f32.mrf.mxu1 }
 0x1d6   : > { %v851_v8 = vpop.f32.mrf.mxu3 }
 0x1d7   : > { %v795_v63 = vpop.f32.mrf.mxu2 }
 0x1d8   : > { %v796_v60 = vadd.f32 %v795_v63, %v767_v24  ;;  %v1355_v24 = vld [vmem:[%s3432_s5 + $0x148] sm:$0xff] }
 0x1d9   : > { %1413 = vmatpush.msrb.mxu2 %v1355_v24 }
 0x1da   : > { %v862_v10 = vadd.f32 %v851_v8, %v796_v60  ;;  %v1356_v60 = vld [vmem:[%s3432_s5 + $0x150] sm:$0xff]  ;;  %v1373_v8 = vld [vmem:[%s3432_s5 + $0x1d8] sm:$0xff] }
 0x1db   : > { %v770_v13 = vpop.f32.mrf.mxu1  ;;  %1449 = vmatpush.msra.mxu1 %v1373_v8  ;;  %1433 = vmatpush.msrb.mxu3 %v1356_v60  ;;  %v1316_v60 = vld [vmem:[%s3432_s5 + $0x10] sm:$0xff]  ;;  %v1495_v8 = vld [vmem:[%s3434_s7 + $0x78] sm:$0xff] }
 0x1df   : > { %v854_v30 = vpop.f32.mrf.mxu3 }
 0x1e3   : > { %v798_v28 = vpop.f32.mrf.mxu2 }
 0x1e4   : > { %v799_v1 = vadd.f32 %v798_v28, %v770_v13  ;;  %v1351_v28 = vld [vmem:[%s3432_s5 + $0x128] sm:$0xff] }
 0x1e5   : > { %1414 = vmatpush.msrb.mxu2 %v1351_v28 }
 0x1e6   : > { %v863_v43 = vadd.f32 %v854_v30, %v799_v1  ;;  %v1369_v30 = vld [vmem:[%s3432_s5 + $0x1b8] sm:$0xff] }
 0x1e7   : > { %1450 = vmatpush.msra.mxu1 %v1369_v30  ;;  %1415 = vmatpush.msrb.mxu2 %v1347_v6  ;;  %v1329_v30 = vld [vmem:[%s3432_s5 + $0x78] sm:$0xff] }
 0x1e8   : > { %v1325_v6 = vld [vmem:[%s3432_s5 + $0x58] sm:$0xff] }
 0x1e9   : > { %v2974_v4 = vpop.f32.mrf.mxu1  ;;  %1451 = vmatpush.msra.mxu1 %v1365_v17  ;;  %v1510_v17 = vld [vmem:[%s3434_s7 + $0xf0] sm:$0xff] }
 0x1eb   : > { %v2976_v59 = vpop.f32.mrf.mxu2  ;;  %1452 = vmatpush.msra.mxu1 %v1361_v23 }
 0x1ec   : > { %v802_v55 = vadd.f32 %v2976_v59, %v2974_v4 }
 0x1ef   : > { %v2978_v35 = vpop.f32.mrf.mxu3 }
 0x1f1   : > { %v776_v61 = vpop.f32.mrf.mxu1 }
 0x1f2   : > { %v1352_v61 = vld [vmem:[%s3432_s5 + $0x130] sm:$0xff] }
 0x1f3   : > { %v804_v16 = vpop.f32.mrf.mxu2  ;;  %1434 = vmatpush.msrb.mxu3 %v1352_v61  ;;  %v1494_v61 = vld [vmem:[%s3434_s7 + $0x70] sm:$0xff] }
 0x1f7   : > { %v860_v5 = vpop.f32.mrf.mxu3 }
 0x1f9   : > { %v923_v19 = vpop.f32.mrf.mxu1 }
 0x1fa   : > { %v934_v36 = vadd.f32 %v923_v19, %v862_v10  ;;  %v864_v10 = vadd.f32 %v2978_v35, %v802_v55  ;;  %v1348_v19 = vld [vmem:[%s3432_s5 + $0x110] sm:$0xff] }
 0x1fb   : > { %v986_v21 = vpop.f32.mrf.mxu2  ;;  %1435 = vmatpush.msrb.mxu3 %v1348_v19 }
 0x1fc   : > { %v997_v25 = vadd.f32 %v986_v21, %v934_v36  ;;  %v1343_v21 = vld [vmem:[%s3432_s5 + $0xe8] sm:$0xff]  ;;  %v1345_v36 = vld [vmem:[%s3432_s5 + $0xf8] sm:$0xff] }
 0x1fd   : > { %1416 = vmatpush.msrb.mxu2 %v1343_v21  ;;  %1436 = vmatpush.msrb.mxu3 %v1344_v0  ;;  %v1493_v21 = vld [vmem:[%s3434_s7 + $0x68] sm:$0xff]  ;;  %v1321_v0 = vld [vmem:[%s3432_s5 + $0x38] sm:$0xff] }
 0x1ff   : > { %v1050_v32 = vpop.f32.mrf.mxu3  ;;  %1417 = vmatpush.msrb.mxu2 %v1339_v22 }
 0x200   : > { %v1061_v2 = vadd.f32 %v1050_v32, %v997_v25 }
 0x201   : > { %v926_v15 = vpop.f32.mrf.mxu1  ;;  %1418 = vmatpush.msrb.mxu2 %v1335_v12  ;;  %v1491_v12 = vld [vmem:[%s3434_s7 + $0x58] sm:$0xff] }
 0x202   : > { %v935_v58 = vadd.f32 %v926_v15, %v863_v43  ;;  %v1357_v15 = vld [vmem:[%s3432_s5 + $0x158] sm:$0xff] }
 0x203   : > { %v989_v51 = vpop.f32.mrf.mxu2  ;;  %1453 = vmatpush.msra.mxu1 %v1357_v15  ;;  %v1492_v15 = vld [vmem:[%s3434_s7 + $0x60] sm:$0xff] }
 0x204   : > { %v998_v56 = vadd.f32 %v989_v51, %v935_v58  ;;  %v1324_v58 = vld [vmem:[%s3432_s5 + $0x50] sm:$0xff] }
 0x205   : > { %1454 = vmatpush.msra.mxu1 %v1353_v41 }
 0x207   : > { %v1053_v34 = vpop.f32.mrf.mxu3  ;;  %1455 = vmatpush.msra.mxu1 %v1349_v50 }
 0x208   : > { %v1062_v13 = vadd.f32 %v1053_v34, %v998_v56  ;;  %v1315_v56 = vld [vmem:[%s3432_s5 + $0x8] sm:$0xff] }
 0x209   : > { %v3001_v29 = vpop.f32.mrf.mxu1  ;;  %1456 = vmatpush.msra.mxu1 %v1345_v36  ;;  %v1505_v36 = vld [vmem:[%s3434_s7 + $0xc8] sm:$0xff] }
 0x20a   : > { %v936_v35 = vadd.f32 %v3001_v29, %v864_v10  ;;  %v1340_v29 = vld [vmem:[%s3432_s5 + $0xd0] sm:$0xff]  ;;  %v338_v10 = vld [vmem:[%s3431_s4] sm:$0x1] }
 0x20b   : > { %v3003_v57 = vpop.f32.mrf.mxu2  ;;  %1437 = vmatpush.msrb.mxu3 %v1340_v29  ;;  %1457 = vmatpush.msra.mxu1 %v1341_v54  ;;  %v1508_v29 = vld [vmem:[%s3434_s7 + $0xe0] sm:$0xff]  ;;  %v1487_v54 = vld [vmem:[%s3434_s7 + $0x38] sm:$0xff] }
 0x20c   : > { %v999_v26 = vadd.f32 %v3003_v57, %v936_v35  ;;  %v1511_v35 = vld [vmem:[%s3434_s7 + $0xf8] sm:$0xff] }
 0x20f   : > { %v3014_v11 = vpop.f32.mrf.mxu3 }
 0x210   : > { %v1063_v57 = vadd.f32 %v3014_v11, %v999_v26  ;;  %v1331_v11 = vld [vmem:[%s3432_s5 + $0x88] sm:$0xff] }
 0x211   : > { %v932_v44 = vpop.f32.mrf.mxu1  ;;  %1419 = vmatpush.msrb.mxu2 %v1331_v11  ;;  %v1509_v26 = vld [vmem:[%s3434_s7 + $0xe8] sm:$0xff]  ;;  %v1506_v11 = vld [vmem:[%s3434_s7 + $0xd0] sm:$0xff] }
 0x212   : > { %v1336_v44 = vld [vmem:[%s3432_s5 + $0xb0] sm:$0xff] }
 0x213   : > { %v995_v42 = vpop.f32.mrf.mxu2  ;;  %1438 = vmatpush.msrb.mxu3 %v1336_v44  ;;  %1420 = vmatpush.msrb.mxu2 %v1327_v39  ;;  %v1507_v44 = vld [vmem:[%s3434_s7 + $0xd8] sm:$0xff] }
 0x215   : > { %1439 = vmatpush.msrb.mxu3 %v1332_v14  ;;  %v1489_v14 = vld [vmem:[%s3434_s7 + $0x48] sm:$0xff] }
 0x217   : > { %v1059_v48 = vpop.f32.mrf.mxu3  ;;  %1440 = vmatpush.msrb.mxu3 %v1328_v37 }
 0x218   : > { %v1323_v48 = vld [vmem:[%s3432_s5 + $0x48] sm:$0xff] }
 0x219   : > { %v1109_v52 = vpop.f32.mrf.mxu1  ;;  %1421 = vmatpush.msrb.mxu2 %v1323_v48  ;;  %1441 = vmatpush.msrb.mxu3 %v1324_v58  ;;  %v1504_v48 = vld [vmem:[%s3434_s7 + $0xc0] sm:$0xff]  ;;  %v1527_v58 = vld [vmem:[%s3434_s7 + $0x178] sm:$0xff] }
 0x21a   : > { %v1120_v47 = vadd.f32 %v1109_v52, %v1061_v2 }
 0x21b   : > { %v1175_v33 = vpop.f32.mrf.mxu2  ;;  %1442 = vmatpush.msrb.mxu3 %v1320_v9  ;;  %v1483_v9 = vld [vmem:[%s3434_s7 + $0x18] sm:$0xff] }
 0x21c   : > { %v1186_v4 = vadd.f32 %v1175_v33, %v1120_v47  ;;  %v1319_v33 = vld [vmem:[%s3432_s5 + $0x28] sm:$0xff]  ;;  %v1337_v47 = vld [vmem:[%s3432_s5 + $0xb8] sm:$0xff] }
 0x21d   : > { %1422 = vmatpush.msrb.mxu2 %v1319_v33  ;;  %1458 = vmatpush.msra.mxu1 %v1337_v47  ;;  %v1485_v33 = vld [vmem:[%s3434_s7 + $0x28] sm:$0xff]  ;;  %v1526_v47 = vld [vmem:[%s3434_s7 + $0x170] sm:$0xff] }
 0x21e   : > { %1443 = vmatpush.msrb.mxu3 %v1316_v60  ;;  %v1543_v60 = vld [vmem:[%s3434_s7 + $0x1f8] sm:$0xff] }
 0x21f   : > { %v1235_v63 = vpop.f32.mrf.mxu3  ;;  %1423 = vmatpush.msrb.mxu2 %v1315_v56  ;;  %1459 = vmatpush.msra.mxu1 %v1333_v20  ;;  %v1524_v56 = vld [vmem:[%s3434_s7 + $0x160] sm:$0xff]  ;;  %v1481_v20 = vld [vmem:[%s3434_s7 + $0x8] sm:$0xff] }
 0x220   : > { %v1246_v18 = vadd.f32 %v1235_v63, %v1186_v4  ;;  %1565 = vmatpush.msra.mxu3 %v1511_v35  ;;  %v1538_v35 = vld [vmem:[%s3434_s7 + $0x1d0] sm:$0xff] }
 0x221   : > { %v1112_v59 = vpop.f32.mrf.mxu1  ;;  %1545 = vmatpush.msra.mxu2 %v1495_v8  ;;  %1460 = vmatpush.msra.mxu1 %v1329_v30  ;;  %v1521_v8 = vld [vmem:[%s3434_s7 + $0x148] sm:$0xff]  ;;  %v1519_v30 = vld [vmem:[%s3434_s7 + $0x138] sm:$0xff] }
 0x222   : > { %v1121_v16 = vadd.f32 %v1112_v59, %v1062_v13  ;;  %v1250_v51 = vrot.slane %v1246_v18, 5  ;;  %1566 = vmatpush.msra.mxu3 %v1510_v17  ;;  %v1535_v17 = vld [vmem:[%s3434_s7 + $0x1b8] sm:$0xff] }
 0x223   : > { %v1178_v5 = vpop.f32.mrf.mxu2  ;;  %1546 = vmatpush.msra.mxu2 %v1494_v61  ;;  %1461 = vmatpush.msra.mxu1 %v1325_v6  ;;  %v1539_v61 = vld [vmem:[%s3434_s7 + $0x1d8] sm:$0xff]  ;;  %v1536_v6 = vld [vmem:[%s3434_s7 + $0x1c0] sm:$0xff] }
 0x224   : > { %v1187_v32 = vadd.f32 %v1178_v5, %v1121_v16  ;;  %v1252_v62 = vmax.f32 %v1246_v18, %v1250_v51  ;;  %1567 = vmatpush.msra.mxu3 %v1509_v26  ;;  %v1499_v26 = vld [vmem:[%s3434_s7 + $0x98] sm:$0xff] }
 0x225   : > { %1547 = vmatpush.msra.mxu2 %v1493_v21  ;;  %1462 = vmatpush.msra.mxu1 %v1321_v0  ;;  %v1500_v21 = vld [vmem:[%s3434_s7 + $0xa0] sm:$0xff]  ;;  %v1533_v0 = vld [vmem:[%s3434_s7 + $0x1a8] sm:$0xff] }
 0x226   : > { %v1254_v43 = vrot.slane %v1252_v62, 1  ;;  %1568 = vmatpush.msra.mxu3 %v1508_v29  ;;  %v1497_v29 = vld [vmem:[%s3434_s7 + $0x88] sm:$0xff] }
 0x227   : > { %v1238_v34 = vpop.f32.mrf.mxu3  ;;  %1548 = vmatpush.msra.mxu2 %v1492_v15  ;;  %v1498_v15 = vld [vmem:[%s3434_s7 + $0x90] sm:$0xff] }
 0x228   : > { %v1247_v31 = vadd.f32 %v1238_v34, %v1187_v32  ;;  %v1256_v27 = vmax.f32 %v1252_v62, %v1254_v43  ;;  %v1317_v34 = vld [vmem:[%s3432_s5 + $0x18] sm:$0xff]  ;;  %1569 = vmatpush.msra.mxu3 %v1507_v44  ;;  %v1528_v44 = vld [vmem:[%s3434_s7 + $0x180] sm:$0xff] }
 0x229   : > { %v1115_v38 = vpop.f32.mrf.mxu1  ;;  %1463 = vmatpush.msra.mxu1 %v1317_v34  ;;  %1549 = vmatpush.msra.mxu2 %v1491_v12  ;;  %v1531_v34 = vld [vmem:[%s3434_s7 + $0x198] sm:$0xff]  ;;  %v1496_v12 = vld [vmem:[%s3434_s7 + $0x80] sm:$0xff] }
 0x22a   : > { %v1263_v42 = vrot.slane %v1247_v31, 5  ;;  %v1122_v46 = vadd.f32 %v1115_v38, %v1063_v57  ;;  %1570 = vmatpush.msra.mxu3 %v1506_v11 }
 0x22b   : > { %v1181_v1 = vpop.f32.mrf.mxu2 }
 0x22c   : > { %v1264_v45 = vsel %vm440_vm0, %v1250_v51, %v1263_v42  ;;  %v1188_v53 = vadd.f32 %v1181_v1, %v1122_v46  ;;  %v1490_v46 = vld [vmem:[%s3434_s7 + $0x50] sm:$0xff]  ;;  %1571 = vmatpush.msra.mxu3 %v1505_v36 }
 0x22d   : > { %v1266_v40 = vmax.f32 %v1246_v18, %v1264_v45  ;;  %v1257_v18 = vadd.f32 %v1256_v27, %v338_v10  ;;  %1550 = vmatpush.msra.mxu2 %v1490_v46  ;;  %v1523_v27 = vld [vmem:[%s3434_s7 + $0x158] sm:$0xff]  ;;  %v1542_v10 = vld [vmem:[%s3434_s7 + $0x1f0] sm:$0xff] }
 0x22e   : > { %1572 = vmatpush.msra.mxu3 %v1504_v48 }
 0x22f   : > { %v1268_v25 = vrot.slane %v1266_v40, 1  ;;  %v1241_v52 = vpop.f32.mrf.mxu3  ;;  %v1259_v57 = vmul.f32 0.025, %v1257_v18  ;;  %1551 = vmatpush.msra.mxu2 %v1489_v14 }
 0x230   : > { %v1248_v2 = vadd.f32 %v1241_v52, %v1188_v53  ;;  %v1486_v52 = vld [vmem:[%s3434_s7 + $0x30] sm:$0xff] }
 0x231   : > { %v1270_v3 = vmax.f32 %v1266_v40, %v1268_v25  ;;  %v1118_v7 = vpop.f32.mrf.mxu1  ;;  %v1488_v40 = vld [vmem:[%s3434_s7 + $0x40] sm:$0xff] }
 0x232   : > { %v1283_v55 = vrot.slane %v1248_v2, 5  ;;  %1552 = vmatpush.msra.mxu2 %v1488_v40  ;;  %v1502_v2 = vld [vmem:[%s3434_s7 + $0xb0] sm:$0xff]  ;;  %v1525_v7 = vld [vmem:[%s3434_s7 + $0x168] sm:$0xff] }
 0x233   : > { %v1274_v24 = vadd.f32 %v3155_v49, %v1270_v3  ;;  %v1184_v63 = vpop.f32.mrf.mxu2  ;;  %v1484_v3 = vld [vmem:[%s3434_s7 + $0x20] sm:$0xff] }
 0x234   : > { %v1284_v13 = vsel %vm440_vm0, %v1263_v42, %v1283_v55  ;;  %v1300_v28 = vmax.f32 %v1247_v31, %v1283_v55  ;;  %vm1258_vm0 = vcmp.gt.f32.partialorder %v1257_v18, 0.0  ;;  %1553 = vmatpush.msra.mxu2 %v1487_v54  ;;  %v1482_v55 = vld [vmem:[%s3434_s7 + $0x10] sm:$0xff] }
 0x235   : > { %v1286_v4 = vmax.f32 %v1247_v31, %v1284_v13  ;;  %v1276_v59 = vmul.f32 0.025, %v1274_v24  ;;  %vm1275_vm15 = vcmp.gt.f32.partialorder %v1274_v24, 0.0  ;;  %v1260_v50 = vsel %vm1258_vm0, %v1257_v18, %v1259_v57  ;;  %v1522_v63 = vld [vmem:[%s3434_s7 + $0x150] sm:$0xff]  ;;  %v1520_v13 = vld [vmem:[%s3434_s7 + $0x140] sm:$0xff]  ;;  %v1501_v18 = vld [vmem:[%s3434_s7 + $0xa8] sm:$0xff] }
 0x236   : > { %v1302_v16 = vrot.slane %v1300_v28, 1  ;;  %1554 = vmatpush.msra.mxu2 %v1486_v52  ;;  %v1513_v57 = vld [vmem:[%s3434_s7 + $0x108] sm:$0xff] }
 0x237   : > { %v1288_v5 = vrot.slane %v1286_v4, 1  ;;  %v1244_v19 = vpop.f32.mrf.mxu3  ;;  %v1277_v22 = vsel %vm1275_vm15, %v1274_v24, %v1276_v59  ;;  %v1480_v24 = vld [vmem:[%s3434_s7] sm:$0xff]  ;;  %v1518_v59 = vld [vmem:[%s3434_s7 + $0x130] sm:$0xff] }
 0x238   : > { %v1304_v23 = vmax.f32 %v1300_v28, %v1302_v16  ;;  %v1279_v38 = vrot.slane %v1277_v22, 2  ;;  %1555 = vmatpush.msra.mxu2 %v1485_v33  ;;  %v1541_v28 = vld [vmem:[%s3434_s7 + $0x1e8] sm:$0xff]  ;;  %v1534_v19 = vld [vmem:[%s3434_s7 + $0x1b0] sm:$0xff]  ;;  %v1532_v22 = vld [vmem:[%s3434_s7 + $0x1a0] sm:$0xff] }
 0x239   : > { %v1290_v32 = vmax.f32 %v1286_v4, %v1288_v5  ;;  %v1540_v4 = vld [vmem:[%s3434_s7 + $0x1e0] sm:$0xff]  ;;  %v1537_v16 = vld [vmem:[%s3434_s7 + $0x1c8] sm:$0xff] }
 0x23a   : > { %v1305_v51 = vadd.f32 %v3155_v49, %v1304_v23  ;;  %v1281_v45 = vadd.f32 %v1279_v38, %v1260_v50  ;;  %1556 = vmatpush.msra.mxu2 %v1484_v3  ;;  %v1517_v5 = vld [vmem:[%s3434_s7 + $0x128] sm:$0xff]  ;;  %v1516_v23 = vld [vmem:[%s3434_s7 + $0x120] sm:$0xff] }
 0x23b   : > { %v1291_v31 = vadd.f32 %v3155_v49, %v1290_v32  ;;  %v1503_v49 = vld [vmem:[%s3434_s7 + $0xb8] sm:$0xff]  ;;  %v1529_v38 = vld [vmem:[%s3434_s7 + $0x188] sm:$0xff] }
 0x23c   : > { %vm1306_vm1 = vcmp.gt.f32.partialorder %v1305_v51, 0.0  ;;  %v1307_v41 = vmul.f32 0.025, %v1305_v51  ;;  %1573 = vmatpush.msra.mxu3 %v1503_v49  ;;  %1557 = vmatpush.msra.mxu2 %v1483_v9  ;;  %v1515_v32 = vld [vmem:[%s3434_s7 + $0x118] sm:$0xff] }
 0x23d   : > { %v1293_v42 = vmul.f32 0.025, %v1291_v31  ;;  %vm1292_vm2 = vcmp.gt.f32.partialorder %v1291_v31, 0.0 }
 0x23e   : > { %v1308_v1 = vsel %vm1306_vm1, %v1305_v51, %v1307_v41  ;;  %1574 = vmatpush.msra.mxu3 %v1502_v2  ;;  %1558 = vmatpush.msra.mxu2 %v1482_v55  ;;  %v1514_v51 = vld [vmem:[%s3434_s7 + $0x110] sm:$0xff]  ;;  %v1512_v41 = vld [vmem:[%s3434_s7 + $0x100] sm:$0xff] }
 0x23f   : > { %v1294_v62 = vsel %vm1292_vm2, %v1291_v31, %v1293_v42  ;;  %v1310_v53 = vrot.slane %v1308_v1, 4  ;;  %v1530_v31 = vld [vmem:[%s3434_s7 + $0x190] sm:$0xff]  ;;  %v1378_v42 = vld [vmem:[%s3433_s6] sm:$0xf] }
 0x240   : > { %v1296_v39 = vrot.slane %v1294_v62, 2  ;;  %1559 = vmatpush.msra.mxu2 %v1481_v20  ;;  %1575 = vmatpush.msra.mxu3 %v1501_v18  ;;  %v1380_v46 = vperm.slane %v1378_v42, 0  ;;  %v1381_v1 = vperm.slane %v1378_v42, 1  ;;  %v1382_v14 = vperm.slane %v1378_v42, 2 }
 0x242   : > { %v1298_v37 = vadd.f32 %v1296_v39, %v1281_v45  ;;  %1560 = vmatpush.msra.mxu2 %v1480_v24  ;;  %1576 = vmatpush.msra.mxu3 %v1500_v21  ;;  %v1383_v39 = vperm.slane %v1378_v42, 3 }
 0x244   : > { %v1312_v43 = vadd.f32 %v1310_v53, %v1298_v37  ;;  %1577 = vmatpush.msra.mxu3 %v1499_v26 }
 0x246   : > { %v1313_v25 = vmul.f32 0.25, %v1312_v43  ;;  %1578 = vmatpush.msra.mxu3 %v1498_v15 }
 0x248   : > { %1404 = vmatmul.f32.vlgmr.msrb.gmra.mxu1 %v1313_v25  ;;  %1424 = vmatmul.f32.vlgmr.msrb.gmra.mxu2 %v1313_v25 }
 0x249   : > { %1444 = vmatmul.f32.vlgmr.msrb.gmra.mxu3 %v1313_v25  ;;  %1585 = vmatpush.msrb.mxu1 %v1527_v58 }
 0x24a   : > { %1605 = vmatpush.msrb.mxu2 %v1543_v60  ;;  %1579 = vmatpush.msra.mxu3 %v1497_v29 }
 0x24b   : > { %1586 = vmatpush.msrb.mxu1 %v1526_v47  ;;  %v1544_v47 = vld [vmem:[%s3435_s8] sm:$0x1] }
 0x24c   : > { %1606 = vmatpush.msrb.mxu2 %v1542_v10  ;;  %1580 = vmatpush.msra.mxu3 %v1496_v12 }
 0x24d   : > { %1587 = vmatpush.msrb.mxu1 %v1525_v7 }
 0x24e   : > { %1607 = vmatpush.msrb.mxu2 %v1541_v28 }
 0x24f   : > { %1588 = vmatpush.msrb.mxu1 %v1524_v56 }
 0x250   : > { %1464 = vmatmul.f32.vlgmr.msra.gmra.mxu1 %v1313_v25  ;;  %1608 = vmatpush.msrb.mxu2 %v1540_v4 }
 0x251   : > { %1589 = vmatpush.msrb.mxu1 %v1523_v27 }
 0x252   : > { %1609 = vmatpush.msrb.mxu2 %v1539_v61 }
 0x253   : > { %1590 = vmatpush.msrb.mxu1 %v1522_v63 }
 0x254   : > { %1610 = vmatpush.msrb.mxu2 %v1538_v35 }
 0x255   : > { %1591 = vmatpush.msrb.mxu1 %v1521_v8 }
 0x256   : > { %1611 = vmatpush.msrb.mxu2 %v1537_v16 }
 0x257   : > { %1592 = vmatpush.msrb.mxu1 %v1520_v13 }
 0x258   : > { %1612 = vmatpush.msrb.mxu2 %v1536_v6 }
 0x259   : > { %1593 = vmatpush.msrb.mxu1 %v1519_v30 }
 0x25a   : > { %1613 = vmatpush.msrb.mxu2 %v1535_v17 }
 0x25b   : > { %1594 = vmatpush.msrb.mxu1 %v1518_v59 }
 0x25c   : > { %1614 = vmatpush.msrb.mxu2 %v1534_v19 }
 0x25d   : > { %1595 = vmatpush.msrb.mxu1 %v1517_v5 }
 0x25e   : > { %1615 = vmatpush.msrb.mxu2 %v1533_v0 }
 0x25f   : > { %1596 = vmatpush.msrb.mxu1 %v1516_v23 }
 0x260   : > { %1616 = vmatpush.msrb.mxu2 %v1532_v22 }
 0x261   : > { %1597 = vmatpush.msrb.mxu1 %v1515_v32 }
 0x262   : > { %1617 = vmatpush.msrb.mxu2 %v1531_v34 }
 0x263   : > { %1598 = vmatpush.msrb.mxu1 %v1514_v51 }
 0x264   : > { %1618 = vmatpush.msrb.mxu2 %v1530_v31 }
 0x265   : > { %1599 = vmatpush.msrb.mxu1 %v1513_v57 }
 0x266   : > { %1619 = vmatpush.msrb.mxu2 %v1529_v38 }
 0x267   : > { %1600 = vmatpush.msrb.mxu1 %v1512_v41 }
 0x268   : > { %1620 = vmatpush.msrb.mxu2 %v1528_v44 }
 0x2c5   : > { %v1405_v11 = vpop.f32.mrf.mxu1 }
 0x2c6   : > { %v1406_v50 = vadd.f32 %v1405_v11, %v1380_v46 }
 0x2c8   : > { %vm1468_vm3 = vcmp.gt.f32.partialorder %v1406_v50, 0.0  ;;  %v1472_v62 = vmul.f32 0.02, %v1406_v50 }
 0x2ca   : > { %v1476_v45 = vsel %vm1468_vm3, %v1406_v50, %v1472_v62 }
 0x2cb   : > { %v1425_v36 = vpop.f32.mrf.mxu2  ;;  %1561 = vmatmul.f32.vlgmr.msra.gmra.mxu2 %v1476_v45 }
 0x2cc   : > { %v1426_v40 = vadd.f32 %v1425_v36, %v1381_v1  ;;  %v1445_v37 = vpop.f32.mrf.mxu3 }
 0x2cd   : > { %v1446_v53 = vadd.f32 %v1445_v37, %v1382_v14  ;;  %v1465_v48 = vpop.f32.mrf.mxu1 }
 0x2ce   : > { %vm1469_vm4 = vcmp.gt.f32.partialorder %v1426_v40, 0.0  ;;  %v1473_v54 = vmul.f32 0.02, %v1426_v40  ;;  %v1466_v43 = vadd.f32 %v1465_v48, %v1383_v39 }
 0x2cf   : > { %vm1470_vm5 = vcmp.gt.f32.partialorder %v1446_v53, 0.0  ;;  %v1474_v49 = vmul.f32 0.02, %v1446_v53 }
 0x2d0   : > { %vm1471_vm6 = vcmp.gt.f32.partialorder %v1466_v43, 0.0  ;;  %v1475_v25 = vmul.f32 0.02, %v1466_v43  ;;  %v1477_v52 = vsel %vm1469_vm4, %v1426_v40, %v1473_v54 }
 0x2d1   : > { %1581 = vmatmul.f32.vlgmr.msra.gmra.mxu3 %v1477_v52  ;;  %v1478_v58 = vsel %vm1470_vm5, %v1446_v53, %v1474_v49 }
 0x2d2   : > { %1601 = vmatmul.f32.vlgmr.msrb.gmra.mxu1 %v1478_v58  ;;  %v1479_v2 = vsel %vm1471_vm6, %v1466_v43, %v1475_v25 }
 0x2d3   : > { %1621 = vmatmul.f32.vlgmr.msrb.gmra.mxu2 %v1479_v2 }
 0x34e   : > { %v1562_v33 = vpop.f32.mrf.mxu2 }
 0x34f   : > { %v1563_v3 = vadd.f32 %v1562_v33, %v1544_v47  ;;  %v1602_v55 = vpop.f32.mrf.mxu1 }
 0x354   : > { %v1582_v7 = vpop.f32.mrf.mxu3 }
 0x355   : > { %v1583_v9 = vadd.f32 %v1582_v7, %v1563_v3 }
 0x356   : > { %v1622_v20 = vpop.f32.mrf.mxu2 }
 0x357   : > { %v1603_v56 = vadd.f32 %v1602_v55, %v1583_v9 }
 0x359   : > { %v1623_v27 = vadd.f32 %v1622_v20, %v1603_v56 }
 0x35b   : > { %1626 = vst.msk [vmem:[%s324_s28] sm:$0x1] %vm1625_vm7, %v1623_v27 }
 0x35c   : > { %1925 = shalt.err (!%p1922_p3)
}
 0x35d   : > { %1857 = dma.vmem_to_hbm [thread:$0]  (%p2050_p5), %s1639_s29, 16, %s1641_s14, %s1628_s16  }
 0x35e PF: > { %p1863_p4 = scmp.ge.s32.totalorder %s1960_s12, 2  ;;  %s1652_s24 = sand.u32 1, %s1948_s30  }
 0x35f   : > { %s1653_s27 = scalar_lea.sflag [#allocation3], %s1652_s24 }
 0x360   : > { %p1860_p7 = pnand %p1863_p4, %p2054_p6 }
 0x362   : > { %p1861_p8 = pneg %p1860_p7 }
 0x364   : > { %1943 = dma.done.wait (%p1861_p8), %s1653_s27, 16  }
 0x365   : > { %1945 = vsyncadd (%p1861_p8), %s1653_s27, 4294967280  ;;  %p19_p9 = scmp.ge.s32.totalorder %s2037_s15, 4   ;;  %s3439_s30 = smov %s1952_s10 }
 0x366   : > { %s3440_s10 = smov %s1956_s11  ;;  %s3441_s11 = smov %s2048_s18 }
 0x367   : > { %s3442_s12 = smov %s2037_s15  ;;  %21 = sbr.rel (!%p19_p9) target bundleno = 3 (0x3), region = 99 }
 0x36c   :  { %1658 = vsyncpa [#allocation3], 1 }
 0x36d   :  { %1660 = vsyncpa [#allocation3 + $0x1], 1 }

</bundles_post_ra>
